<compile_context>
chip_gen: v5e
topology: v5e:2x2
jax: 0.10.0
libtpu: 0.0.40
codegen_flags: <defaults>
</compile_context>

<pallas_src>
import functools

import jax
import jax.numpy as jnp
import numpy as np
from jax.experimental import pallas as pl
from jax.experimental.pallas import tpu as pltpu


# --------------------------------- kernel ------------------------------------

def _layer_kernel(
    # batched activations (one batch chunk per grid step)
    tgt_ref, mem_ref, qpos_ref, pos_ref,
    # self-attention params (q/k fused; scale folded into wq/bq)
    sa_wqk, sa_bqk, sa_wv, sa_bv, sa_wo, sa_bo,
    # cross-attention params (scale folded into wq/bq)
    ca_wq, ca_bq, ca_wk, ca_bk, ca_wv, ca_bv, ca_wo, ca_bo,
    # FFN params
    l1_w, l1_b, l2_w, l2_b,
    # stacked layer-norm params: rows 0/1/2 = norm1/norm2/norm3
    norm_g, norm_b,
    # output
    out_ref,
    *, nhead, use_bf16,
):
    f32 = jnp.float32
    cdt = jnp.bfloat16 if use_bf16 else jnp.float32

    NB, L, E = tgt_ref.shape
    S = mem_ref.shape[1]
    hd = E // nhead

    # Flatten batch into the matmul M-dimension (leading-dim merge only; last dim
    # untouched so no lane relayout).
    tgt = tgt_ref[...].astype(f32).reshape(NB * L, E)
    qpos = qpos_ref[...].astype(f32).reshape(NB * L, E)
    mem = mem_ref[...].astype(f32).reshape(NB * S, E)
    pos = pos_ref[...].astype(f32).reshape(NB * S, E)

    gamma_all = norm_g[...]   # (3, E)
    beta_all = norm_b[...]    # (3, E)

    def mm(x, w_ref):
        # bf16 (or f32) MXU operands, f32 accumulation.
        return jnp.dot(x.astype(cdt), w_ref[...].astype(cdt),
                       preferred_element_type=f32)

    def layernorm(x, idx, eps=1e-5):
        mu = jnp.mean(x, axis=-1, keepdims=True)
        var = jnp.mean((x - mu) ** 2, axis=-1, keepdims=True)
        g = gamma_all[idx:idx + 1, :]
        b = beta_all[idx:idx + 1, :]
        return (x - mu) * jax.lax.rsqrt(var + eps) * g + b

    def attention(q, k, v, lq, lk):
        # q: (NB*lq, E) already scaled; k, v: (NB*lk, E); all f32.
        q3 = q.reshape(NB, lq, E)
        k3 = k.reshape(NB, lk, E)
        v3 = v.reshape(NB, lk, E)
        # Stack all (head, batch) pairs on the leading (major) axis so the score and
        # context matmuls are each a SINGLE batched einsum (single batch dim — the
        # Mosaic-proven rank-3 dot_general pattern).
        qh = jnp.concatenate([q3[:, :, h * hd:(h + 1) * hd] for h in range(nhead)], axis=0)
        kh = jnp.concatenate([k3[:, :, h * hd:(h + 1) * hd] for h in range(nhead)], axis=0)
        vh = jnp.concatenate([v3[:, :, h * hd:(h + 1) * hd] for h in range(nhead)], axis=0)
        s = jnp.einsum("bld,bsd->bls", qh.astype(cdt), kh.astype(cdt),
                       preferred_element_type=f32)                 # (nhead*NB, lq, lk)
        s = s - jnp.max(s, axis=-1, keepdims=True)
        p = jnp.exp(s)
        denom = jnp.sum(p, axis=-1, keepdims=True)
        p = p * pl.reciprocal(denom, approx=use_bf16)              # EUP slot on fast path
        ctx = jnp.einsum("bls,bsd->bld", p.astype(cdt), vh.astype(cdt),
                         preferred_element_type=f32)               # (nhead*NB, lq, hd)
        ctx = jnp.concatenate([ctx[h * NB:(h + 1) * NB] for h in range(nhead)], axis=-1)
        return ctx.reshape(NB * lq, E)                             # (NB*lq, E)

    # ---- self attention (q = k = tgt + query_pos, value = tgt) ----
    qk_in = tgt + qpos
    qk = mm(qk_in, sa_wqk) + sa_bqk[...]        # fused (NB*L, 2E)
    q = qk[:, :E]
    k = qk[:, E:]
    v = mm(tgt, sa_wv) + sa_bv[...]
    sa_ctx = attention(q, k, v, L, L)
    sa_out = mm(sa_ctx, sa_wo) + sa_bo[...]
    x = layernorm(tgt + sa_out, 0)

    # ---- cross attention against memory (key = mem + pos, value = mem) ----
    cq = mm(x + qpos, ca_wq) + ca_bq[...]
    ck = mm(mem + pos, ca_wk) + ca_bk[...]
    cv = mm(mem, ca_wv) + ca_bv[...]
    ca_ctx = attention(cq, ck, cv, L, S)
    ca_out = mm(ca_ctx, ca_wo) + ca_bo[...]
    x = layernorm(x + ca_out, 1)

    # ---- feed-forward (relu; dropout identity in eval) ----
    h1 = jnp.maximum(mm(x, l1_w) + l1_b[...], 0.0)
    ff = mm(h1, l2_w) + l2_b[...]
    x = layernorm(x + ff, 2)

    out_ref[...] = x.reshape(NB, L, E).astype(out_ref.dtype)


# -------------------------------- wrapper -------------------------------------

def enhanced_memory_attention_layer(tgt, memory, params, *,
                                    pos=None, query_pos=None, nhead=4,
                                    use_bf16=True, batch_chunks=None):
    """tgt: (L, N, E), memory: (S, N, E) — PyTorch (seq, batch, embed) layout."""
    L, N, E = tgt.shape
    S = memory.shape[0]
    assert E % nhead == 0
    if query_pos is None:
        query_pos = jnp.zeros_like(tgt)
    if pos is None:
        pos = jnp.zeros_like(memory)

    # Grid over batch *chunks*; keep 2 chunks when possible so v7x's second
    # TensorCore can take half the batch (harmless on v5e/v6e).
    if batch_chunks is None:
        batch_chunks = 2 if (N % 2 == 0 and N >= 2) else 1
    assert N % batch_chunks == 0
    NB = N // batch_chunks

    # transpose to kernel layout (batch, seq, d_model)
    tgt_b = jnp.transpose(tgt, (1, 0, 2))
    mem_b = jnp.transpose(memory, (1, 0, 2))
    qpos_b = jnp.transpose(query_pos, (1, 0, 2))
    pos_b = jnp.transpose(pos, (1, 0, 2))

    f32 = jnp.float32
    wdt = jnp.bfloat16 if use_bf16 else jnp.float32
    hd = E // nhead
    scale = 1.0 / float(np.sqrt(hd))

    # ---- fold the attention scale into Wq/bq; fuse self-attn Wq|Wk; cast weights ----
    sa_wqk = jnp.concatenate([params["sa_wq"] * scale, params["sa_wk"]], axis=1).astype(wdt)
    sa_bqk = jnp.concatenate([params["sa_bq"] * scale, params["sa_bk"]], axis=1).astype(f32)
    sa_wv = params["sa_wv"].astype(wdt)
    sa_bv = params["sa_bv"].astype(f32)
    sa_wo = params["sa_wo"].astype(wdt)
    sa_bo = params["sa_bo"].astype(f32)
    ca_wq = (params["ca_wq"] * scale).astype(wdt)
    ca_bq = (params["ca_bq"] * scale).astype(f32)
    ca_wk = params["ca_wk"].astype(wdt)
    ca_bk = params["ca_bk"].astype(f32)
    ca_wv = params["ca_wv"].astype(wdt)
    ca_bv = params["ca_bv"].astype(f32)
    ca_wo = params["ca_wo"].astype(wdt)
    ca_bo = params["ca_bo"].astype(f32)
    l1_w = params["l1_w"].astype(wdt)
    l1_b = params["l1_b"].astype(f32)
    l2_w = params["l2_w"].astype(wdt)
    l2_b = params["l2_b"].astype(f32)
    norm_g = jnp.concatenate([params["n1_g"], params["n2_g"], params["n3_g"]], axis=0).astype(f32)
    norm_b = jnp.concatenate([params["n1_b"], params["n2_b"], params["n3_b"]], axis=0).astype(f32)

    param_list = [
        sa_wqk, sa_bqk, sa_wv, sa_bv, sa_wo, sa_bo,
        ca_wq, ca_bq, ca_wk, ca_bk, ca_wv, ca_bv, ca_wo, ca_bo,
        l1_w, l1_b, l2_w, l2_b,
        norm_g, norm_b,
    ]

    def batched_spec(seq):
        return pl.BlockSpec((NB, seq, E), lambda g: (g, 0, 0))

    def full_spec(arr):
        nd = arr.ndim
        return pl.BlockSpec(arr.shape, lambda g, _nd=nd: (0,) * _nd)

    in_specs = ([batched_spec(L), batched_spec(S), batched_spec(L), batched_spec(S)]
                + [full_spec(p) for p in param_list])
    out_specs = pl.BlockSpec((NB, L, E), lambda g: (g, 0, 0))

    out_b = pl.pallas_call(
        functools.partial(_layer_kernel, nhead=nhead, use_bf16=use_bf16),
        grid=(batch_chunks,),
        in_specs=in_specs,
        out_specs=out_specs,
        out_shape=jax.ShapeDtypeStruct((N, L, E), jnp.float32),
        compiler_params=pltpu.CompilerParams(
            dimension_semantics=("parallel",)),
    )(tgt_b, mem_b, qpos_b, pos_b, *param_list)

    return jnp.transpose(out_b, (1, 0, 2))  # back to (L, N, E)


# ------------------------- deterministic param init ---------------------------

def init_params(key, d_model, dim_feedforward):
    ks = jax.random.split(key, 20)
    w = lambda k, shape, s=0.08: (jax.random.normal(k, shape) * s).astype(jnp.float32)
    E, F = d_model, dim_feedforward
    return {
        # self-attention (weights stored (in, out); biases (1, E))
        "sa_wq": w(ks[0], (E, E)), "sa_wk": w(ks[1], (E, E)), "sa_wv": w(ks[2], (E, E)),
        "sa_bq": w(ks[3], (1, E)), "sa_bk": w(ks[4], (1, E)), "sa_bv": w(ks[5], (1, E)),
        "sa_wo": w(ks[6], (E, E)), "sa_bo": w(ks[7], (1, E)),
        # cross-attention
        "ca_wq": w(ks[8], (E, E)), "ca_wk": w(ks[9], (E, E)), "ca_wv": w(ks[10], (E, E)),
        "ca_bq": w(ks[11], (1, E)), "ca_bk": w(ks[12], (1, E)), "ca_bv": w(ks[13], (1, E)),
        "ca_wo": w(ks[14], (E, E)), "ca_bo": w(ks[15], (1, E)),
        # FFN
        "l1_w": w(ks[16], (E, F)), "l1_b": w(ks[17], (1, F)),
        "l2_w": w(ks[18], (F, E)), "l2_b": w(ks[19], (1, E)),
        # layer norms
        "n1_g": jnp.ones((1, E), jnp.float32), "n1_b": jnp.zeros((1, E), jnp.float32),
        "n2_g": jnp.ones((1, E), jnp.float32), "n2_b": jnp.zeros((1, E), jnp.float32),
        "n3_g": jnp.ones((1, E), jnp.float32), "n3_b": jnp.zeros((1, E), jnp.float32),
    }


# ----------------------------- pure-JAX reference -----------------------------

def _ref_mha(xq, xk, xv, p, pre, nhead):
    q = xq @ p[pre + "wq"] + p[pre + "bq"]
    k = xk @ p[pre + "wk"] + p[pre + "bk"]
    v = xv @ p[pre + "wv"] + p[pre + "bv"]
    L, E = q.shape
    S = k.shape[0]
    hd = E // nhead
    qh = q.reshape(L, nhead, hd).transpose(1, 0, 2)
    kh = k.reshape(S, nhead, hd).transpose(1, 0, 2)
    vh = v.reshape(S, nhead, hd).transpose(1, 0, 2)
    s = jnp.einsum("hld,hsd->hls", qh, kh) / np.sqrt(hd)
    a = jax.nn.softmax(s, axis=-1)
    ctx = jnp.einsum("hls,hsd->hld", a, vh).transpose(1, 0, 2).reshape(L, E)
    return ctx @ p[pre + "wo"] + p[pre + "bo"]


def _ref_ln(x, g, b, eps=1e-5):
    mu = x.mean(-1, keepdims=True)
    var = ((x - mu) ** 2).mean(-1, keepdims=True)
    return (x - mu) / jnp.sqrt(var + eps) * g + b


def reference_layer(tgt, memory, p, pos, query_pos, nhead):
    outs = []
    for n in range(tgt.shape[1]):
        t, m = tgt[:, n], memory[:, n]
        qp, ps = query_pos[:, n], pos[:, n]
        qk = t + qp
        t = _ref_ln(t + _ref_mha(qk, qk, t, p, "sa_", nhead), p["n1_g"], p["n1_b"])
        t = _ref_ln(t + _ref_mha(t + qp, m + ps, m, p, "ca_", nhead),
                    p["n2_g"], p["n2_b"])
        ff = jnp.maximum(t @ p["l1_w"] + p["l1_b"], 0.0) @ p["l2_w"] + p["l2_b"]
        t = _ref_ln(t + ff, p["n3_g"], p["n3_b"])
        outs.append(t)
    return jnp.stack(outs, axis=1)


# ----------------------------------- main --------------------------------------

if __name__ == "__main__":
    d_model = 32
    nhead = 4
    dim_feedforward = 64
    L, S, N = 8, 16, 4  # tgt seq len, memory seq len, batch (2 chunks of 2)

    key = jax.random.PRNGKey(0)
    k_p, k_t, k_m, k_qp, k_pos = jax.random.split(key, 5)
    params = init_params(k_p, d_model, dim_feedforward)

    tgt = jax.random.normal(k_t, (L, N, d_model), jnp.float32)
    memory = jax.random.normal(k_m, (S, N, d_model), jnp.float32)
    query_pos = jax.random.normal(k_qp, (L, N, d_model), jnp.float32)
    pos = jax.random.normal(k_pos, (S, N, d_model), jnp.float32)

    ref = reference_layer(tgt, memory, params, pos, query_pos, nhead)

    # Exact path (f32 MXU operands, exact reciprocal) — tight correctness check.
    out_f32 = enhanced_memory_attention_layer(
        tgt, memory, params, pos=pos, query_pos=query_pos, nhead=nhead,
        use_bf16=False)
    out_f32 = jax.block_until_ready(out_f32)
    assert out_f32.shape == (L, N, d_model)
    assert np.allclose(np.asarray(out_f32), np.asarray(ref), atol=1e-4, rtol=1e-4)

    # Fast path (bf16 MXU operands + approx EUP reciprocal) — loose check.
    out_fast = enhanced_memory_attention_layer(
        tgt, memory, params, pos=pos, query_pos=query_pos, nhead=nhead,
        use_bf16=True)
    out_fast = jax.block_until_ready(out_fast)
    assert out_fast.shape == (L, N, d_model)
    assert np.allclose(np.asarray(out_fast), np.asarray(ref), atol=5e-2, rtol=5e-2)

    print("KERNEL_OK")
</pallas_src>

<mosaic_0001>
module attributes {stable_mosaic.version = 11 : i64} {
  func.func @_layer_kernel(%arg0: i32, %arg1: memref<2x8x32xf32, #tpu.memory_space<vmem>>, %arg2: memref<2x16x32xf32, #tpu.memory_space<vmem>>, %arg3: memref<2x8x32xf32, #tpu.memory_space<vmem>>, %arg4: memref<2x16x32xf32, #tpu.memory_space<vmem>>, %arg5: memref<32x64xf32, #tpu.memory_space<vmem>>, %arg6: memref<1x64xf32, #tpu.memory_space<vmem>>, %arg7: memref<32x32xf32, #tpu.memory_space<vmem>>, %arg8: memref<1x32xf32, #tpu.memory_space<vmem>>, %arg9: memref<32x32xf32, #tpu.memory_space<vmem>>, %arg10: memref<1x32xf32, #tpu.memory_space<vmem>>, %arg11: memref<32x32xf32, #tpu.memory_space<vmem>>, %arg12: memref<1x32xf32, #tpu.memory_space<vmem>>, %arg13: memref<32x32xf32, #tpu.memory_space<vmem>>, %arg14: memref<1x32xf32, #tpu.memory_space<vmem>>, %arg15: memref<32x32xf32, #tpu.memory_space<vmem>>, %arg16: memref<1x32xf32, #tpu.memory_space<vmem>>, %arg17: memref<32x32xf32, #tpu.memory_space<vmem>>, %arg18: memref<1x32xf32, #tpu.memory_space<vmem>>, %arg19: memref<32x64xf32, #tpu.memory_space<vmem>>, %arg20: memref<1x64xf32, #tpu.memory_space<vmem>>, %arg21: memref<64x32xf32, #tpu.memory_space<vmem>>, %arg22: memref<1x32xf32, #tpu.memory_space<vmem>>, %arg23: memref<3x32xf32, #tpu.memory_space<vmem>>, %arg24: memref<3x32xf32, #tpu.memory_space<vmem>>, %arg25: memref<2x8x32xf32, #tpu.memory_space<vmem>>) attributes {dimension_semantics = [#tpu.dimension_semantics<parallel>], iteration_bounds = array<i64: 2>, scalar_prefetch = 0 : i64, scratch_operands = 0 : i64, tpu.core_type = #tpu.core_type<tc>, window_params = [{transform_indices = @transform_0, window_bounds = array<i64: 2, 8, 32>}, {transform_indices = @transform_1, window_bounds = array<i64: 2, 16, 32>}, {transform_indices = @transform_2, window_bounds = array<i64: 2, 8, 32>}, {transform_indices = @transform_3, window_bounds = array<i64: 2, 16, 32>}, {pipeline_mode = #tpu.pipeline_mode<synchronous>, transform_indices = @transform_4, window_bounds = array<i64: 32, 64>}, {pipeline_mode = #tpu.pipeline_mode<synchronous>, transform_indices = @transform_5, window_bounds = array<i64: 1, 64>}, {pipeline_mode = #tpu.pipeline_mode<synchronous>, transform_indices = @transform_6, window_bounds = array<i64: 32, 32>}, {pipeline_mode = #tpu.pipeline_mode<synchronous>, transform_indices = @transform_7, window_bounds = array<i64: 1, 32>}, {pipeline_mode = #tpu.pipeline_mode<synchronous>, transform_indices = @transform_8, window_bounds = array<i64: 32, 32>}, {pipeline_mode = #tpu.pipeline_mode<synchronous>, transform_indices = @transform_9, window_bounds = array<i64: 1, 32>}, {pipeline_mode = #tpu.pipeline_mode<synchronous>, transform_indices = @transform_10, window_bounds = array<i64: 32, 32>}, {pipeline_mode = #tpu.pipeline_mode<synchronous>, transform_indices = @transform_11, window_bounds = array<i64: 1, 32>}, {pipeline_mode = #tpu.pipeline_mode<synchronous>, transform_indices = @transform_12, window_bounds = array<i64: 32, 32>}, {pipeline_mode = #tpu.pipeline_mode<synchronous>, transform_indices = @transform_13, window_bounds = array<i64: 1, 32>}, {pipeline_mode = #tpu.pipeline_mode<synchronous>, transform_indices = @transform_14, window_bounds = array<i64: 32, 32>}, {pipeline_mode = #tpu.pipeline_mode<synchronous>, transform_indices = @transform_15, window_bounds = array<i64: 1, 32>}, {pipeline_mode = #tpu.pipeline_mode<synchronous>, transform_indices = @transform_16, window_bounds = array<i64: 32, 32>}, {pipeline_mode = #tpu.pipeline_mode<synchronous>, transform_indices = @transform_17, window_bounds = array<i64: 1, 32>}, {pipeline_mode = #tpu.pipeline_mode<synchronous>, transform_indices = @transform_18, window_bounds = array<i64: 32, 64>}, {pipeline_mode = #tpu.pipeline_mode<synchronous>, transform_indices = @transform_19, window_bounds = array<i64: 1, 64>}, {pipeline_mode = #tpu.pipeline_mode<synchronous>, transform_indices = @transform_20, window_bounds = array<i64: 64, 32>}, {pipeline_mode = #tpu.pipeline_mode<synchronous>, transform_indices = @transform_21, window_bounds = array<i64: 1, 32>}, {pipeline_mode = #tpu.pipeline_mode<synchronous>, transform_indices = @transform_22, window_bounds = array<i64: 3, 32>}, {pipeline_mode = #tpu.pipeline_mode<synchronous>, transform_indices = @transform_23, window_bounds = array<i64: 3, 32>}, {transform_indices = @transform_24, window_bounds = array<i64: 2, 8, 32>}]} {
    %c0 = arith.constant 0 : index
    %c0_0 = arith.constant 0 : index
    %c0_1 = arith.constant 0 : index
    %0 = vector.load %arg1[%c0, %c0_0, %c0_1] : memref<2x8x32xf32, #tpu.memory_space<vmem>>, vector<2x8x32xf32>
    %1 = vector.shape_cast %0 : vector<2x8x32xf32> to vector<16x32xf32>
    %c0_2 = arith.constant 0 : index
    %c0_3 = arith.constant 0 : index
    %c0_4 = arith.constant 0 : index
    %2 = vector.load %arg3[%c0_2, %c0_3, %c0_4] : memref<2x8x32xf32, #tpu.memory_space<vmem>>, vector<2x8x32xf32>
    %3 = vector.shape_cast %2 : vector<2x8x32xf32> to vector<16x32xf32>
    %c0_5 = arith.constant 0 : index
    %c0_6 = arith.constant 0 : index
    %c0_7 = arith.constant 0 : index
    %4 = vector.load %arg2[%c0_5, %c0_6, %c0_7] : memref<2x16x32xf32, #tpu.memory_space<vmem>>, vector<2x16x32xf32>
    %5 = vector.shape_cast %4 : vector<2x16x32xf32> to vector<32x32xf32>
    %c0_8 = arith.constant 0 : index
    %c0_9 = arith.constant 0 : index
    %c0_10 = arith.constant 0 : index
    %6 = vector.load %arg4[%c0_8, %c0_9, %c0_10] : memref<2x16x32xf32, #tpu.memory_space<vmem>>, vector<2x16x32xf32>
    %7 = vector.shape_cast %6 : vector<2x16x32xf32> to vector<32x32xf32>
    %c0_11 = arith.constant 0 : index
    %c0_12 = arith.constant 0 : index
    %8 = vector.load %arg23[%c0_11, %c0_12] : memref<3x32xf32, #tpu.memory_space<vmem>>, vector<3x32xf32>
    %c0_13 = arith.constant 0 : index
    %c0_14 = arith.constant 0 : index
    %9 = vector.load %arg24[%c0_13, %c0_14] : memref<3x32xf32, #tpu.memory_space<vmem>>, vector<3x32xf32>
    %10 = arith.addf %1, %3 : vector<16x32xf32>
    %c0_15 = arith.constant 0 : index
    %c0_16 = arith.constant 0 : index
    %11 = vector.load %arg5[%c0_15, %c0_16] : memref<32x64xf32, #tpu.memory_space<vmem>>, vector<32x64xf32>
    %cst = arith.constant dense<0.000000e+00> : vector<16x64xf32>
    %12 = tpu.matmul %10, %11, %cst {dimension_numbers = #tpu.dot_dimension_numbers<[1], [0], [0], [1], [0, 0, 1, 1], [], []>} : vector<16x32xf32>, vector<32x64xf32>, vector<16x64xf32> -> vector<16x64xf32>
    %c0_17 = arith.constant 0 : index
    %c0_18 = arith.constant 0 : index
    %13 = vector.load %arg6[%c0_17, %c0_18] : memref<1x64xf32, #tpu.memory_space<vmem>>, vector<1x64xf32>
    %14 = vector.broadcast %13 : vector<1x64xf32> to vector<16x64xf32>
    %15 = arith.addf %12, %14 : vector<16x64xf32>
    %16 = vector.extract_strided_slice %15 {offsets = [0, 0], sizes = [16, 32], strides = [1, 1]} : vector<16x64xf32> to vector<16x32xf32>
    %17 = vector.extract_strided_slice %15 {offsets = [0, 32], sizes = [16, 32], strides = [1, 1]} : vector<16x64xf32> to vector<16x32xf32>
    %c0_19 = arith.constant 0 : index
    %c0_20 = arith.constant 0 : index
    %18 = vector.load %arg7[%c0_19, %c0_20] : memref<32x32xf32, #tpu.memory_space<vmem>>, vector<32x32xf32>
    %cst_21 = arith.constant dense<0.000000e+00> : vector<16x32xf32>
    %19 = tpu.matmul %1, %18, %cst_21 {dimension_numbers = #tpu.dot_dimension_numbers<[1], [0], [0], [1], [0, 0, 1, 1], [], []>} : vector<16x32xf32>, vector<32x32xf32>, vector<16x32xf32> -> vector<16x32xf32>
    %c0_22 = arith.constant 0 : index
    %c0_23 = arith.constant 0 : index
    %20 = vector.load %arg8[%c0_22, %c0_23] : memref<1x32xf32, #tpu.memory_space<vmem>>, vector<1x32xf32>
    %21 = vector.broadcast %20 : vector<1x32xf32> to vector<16x32xf32>
    %22 = arith.addf %19, %21 : vector<16x32xf32>
    %23 = vector.shape_cast %16 : vector<16x32xf32> to vector<2x8x32xf32>
    %24 = vector.shape_cast %17 : vector<16x32xf32> to vector<2x8x32xf32>
    %25 = vector.shape_cast %22 : vector<16x32xf32> to vector<2x8x32xf32>
    %26 = vector.extract_strided_slice %23 {offsets = [0, 0, 0], sizes = [2, 8, 8], strides = [1, 1, 1]} : vector<2x8x32xf32> to vector<2x8x8xf32>
    %27 = vector.extract_strided_slice %23 {offsets = [0, 0, 8], sizes = [2, 8, 8], strides = [1, 1, 1]} : vector<2x8x32xf32> to vector<2x8x8xf32>
    %28 = vector.extract_strided_slice %23 {offsets = [0, 0, 16], sizes = [2, 8, 8], strides = [1, 1, 1]} : vector<2x8x32xf32> to vector<2x8x8xf32>
    %29 = vector.extract_strided_slice %23 {offsets = [0, 0, 24], sizes = [2, 8, 8], strides = [1, 1, 1]} : vector<2x8x32xf32> to vector<2x8x8xf32>
    %30 = tpu.concatenate %26, %27, %28, %29 in 0 : vector<2x8x8xf32>, vector<2x8x8xf32>, vector<2x8x8xf32>, vector<2x8x8xf32> -> vector<8x8x8xf32>
    %31 = vector.extract_strided_slice %24 {offsets = [0, 0, 0], sizes = [2, 8, 8], strides = [1, 1, 1]} : vector<2x8x32xf32> to vector<2x8x8xf32>
    %32 = vector.extract_strided_slice %24 {offsets = [0, 0, 8], sizes = [2, 8, 8], strides = [1, 1, 1]} : vector<2x8x32xf32> to vector<2x8x8xf32>
    %33 = vector.extract_strided_slice %24 {offsets = [0, 0, 16], sizes = [2, 8, 8], strides = [1, 1, 1]} : vector<2x8x32xf32> to vector<2x8x8xf32>
    %34 = vector.extract_strided_slice %24 {offsets = [0, 0, 24], sizes = [2, 8, 8], strides = [1, 1, 1]} : vector<2x8x32xf32> to vector<2x8x8xf32>
    %35 = tpu.concatenate %31, %32, %33, %34 in 0 : vector<2x8x8xf32>, vector<2x8x8xf32>, vector<2x8x8xf32>, vector<2x8x8xf32> -> vector<8x8x8xf32>
    %36 = vector.extract_strided_slice %25 {offsets = [0, 0, 0], sizes = [2, 8, 8], strides = [1, 1, 1]} : vector<2x8x32xf32> to vector<2x8x8xf32>
    %37 = vector.extract_strided_slice %25 {offsets = [0, 0, 8], sizes = [2, 8, 8], strides = [1, 1, 1]} : vector<2x8x32xf32> to vector<2x8x8xf32>
    %38 = vector.extract_strided_slice %25 {offsets = [0, 0, 16], sizes = [2, 8, 8], strides = [1, 1, 1]} : vector<2x8x32xf32> to vector<2x8x8xf32>
    %39 = vector.extract_strided_slice %25 {offsets = [0, 0, 24], sizes = [2, 8, 8], strides = [1, 1, 1]} : vector<2x8x32xf32> to vector<2x8x8xf32>
    %40 = tpu.concatenate %36, %37, %38, %39 in 0 : vector<2x8x8xf32>, vector<2x8x8xf32>, vector<2x8x8xf32>, vector<2x8x8xf32> -> vector<8x8x8xf32>
    "tpu.trace_start"() <{level = 10 : i32, message = "bld,bsd->bls"}> : () -> ()
    %cst_24 = arith.constant dense<0.000000e+00> : vector<8x8x8xf32>
    %41 = tpu.matmul %30, %35, %cst_24 {dimension_numbers = #tpu.dot_dimension_numbers<[2], [2], [1], [1], [0, 0, 0, 1, 1, 1], [0], [0]>} : vector<8x8x8xf32>, vector<8x8x8xf32>, vector<8x8x8xf32> -> vector<8x8x8xf32>
    "tpu.trace_stop"() : () -> ()
    %cst_25 = arith.constant dense<0xFF800000> : vector<8x8xf32>
    %42 = vector.multi_reduction <maximumf>, %41, %cst_25 [2] : vector<8x8x8xf32> to vector<8x8xf32>
    %43 = vector.shape_cast %42 : vector<8x8xf32> to vector<8x8x1xf32>
    %44 = vector.broadcast %43 : vector<8x8x1xf32> to vector<8x8x8xf32>
    %45 = arith.subf %41, %44 : vector<8x8x8xf32>
    %46 = math.exp %45 : vector<8x8x8xf32>
    %cst_26 = arith.constant dense<0.000000e+00> : vector<8x8xf32>
    %47 = vector.multi_reduction <add>, %46, %cst_26 [2] : vector<8x8x8xf32> to vector<8x8xf32>
    %48 = vector.shape_cast %47 : vector<8x8xf32> to vector<8x8x1xf32>
    %49 = tpu.reciprocal %48 : vector<8x8x1xf32> -> vector<8x8x1xf32>
    %50 = vector.broadcast %49 : vector<8x8x1xf32> to vector<8x8x8xf32>
    %51 = arith.mulf %46, %50 : vector<8x8x8xf32>
    "tpu.trace_start"() <{level = 10 : i32, message = "bls,bsd->bld"}> : () -> ()
    %cst_27 = arith.constant dense<0.000000e+00> : vector<8x8x8xf32>
    %52 = tpu.matmul %51, %40, %cst_27 {dimension_numbers = #tpu.dot_dimension_numbers<[2], [1], [1], [2], [0, 0, 0, 1, 1, 2], [0], [0]>} : vector<8x8x8xf32>, vector<8x8x8xf32>, vector<8x8x8xf32> -> vector<8x8x8xf32>
    "tpu.trace_stop"() : () -> ()
    %53 = vector.extract_strided_slice %52 {offsets = [0, 0, 0], sizes = [2, 8, 8], strides = [1, 1, 1]} : vector<8x8x8xf32> to vector<2x8x8xf32>
    %54 = vector.extract_strided_slice %52 {offsets = [2, 0, 0], sizes = [2, 8, 8], strides = [1, 1, 1]} : vector<8x8x8xf32> to vector<2x8x8xf32>
    %55 = vector.extract_strided_slice %52 {offsets = [4, 0, 0], sizes = [2, 8, 8], strides = [1, 1, 1]} : vector<8x8x8xf32> to vector<2x8x8xf32>
    %56 = vector.extract_strided_slice %52 {offsets = [6, 0, 0], sizes = [2, 8, 8], strides = [1, 1, 1]} : vector<8x8x8xf32> to vector<2x8x8xf32>
    %57 = tpu.concatenate %53, %54, %55, %56 in 2 : vector<2x8x8xf32>, vector<2x8x8xf32>, vector<2x8x8xf32>, vector<2x8x8xf32> -> vector<2x8x32xf32>
    %58 = vector.shape_cast %57 : vector<2x8x32xf32> to vector<16x32xf32>
    %c0_28 = arith.constant 0 : index
    %c0_29 = arith.constant 0 : index
    %59 = vector.load %arg9[%c0_28, %c0_29] : memref<32x32xf32, #tpu.memory_space<vmem>>, vector<32x32xf32>
    %cst_30 = arith.constant dense<0.000000e+00> : vector<16x32xf32>
    %60 = tpu.matmul %58, %59, %cst_30 {dimension_numbers = #tpu.dot_dimension_numbers<[1], [0], [0], [1], [0, 0, 1, 1], [], []>} : vector<16x32xf32>, vector<32x32xf32>, vector<16x32xf32> -> vector<16x32xf32>
    %c0_31 = arith.constant 0 : index
    %c0_32 = arith.constant 0 : index
    %61 = vector.load %arg10[%c0_31, %c0_32] : memref<1x32xf32, #tpu.memory_space<vmem>>, vector<1x32xf32>
    %62 = vector.broadcast %61 : vector<1x32xf32> to vector<16x32xf32>
    %63 = arith.addf %60, %62 : vector<16x32xf32>
    %64 = arith.addf %1, %63 : vector<16x32xf32>
    %cst_33 = arith.constant dense<0.000000e+00> : vector<16xf32>
    %65 = vector.multi_reduction <add>, %64, %cst_33 [1] : vector<16x32xf32> to vector<16xf32>
    %66 = vector.shape_cast %65 : vector<16xf32> to vector<16x1xf32>
    %cst_34 = arith.constant 3.200000e+01 : f32
    %67 = vector.broadcast %cst_34 : f32 to vector<16x1xf32>
    %68 = arith.divf %66, %67 : vector<16x1xf32>
    %69 = vector.broadcast %68 : vector<16x1xf32> to vector<16x32xf32>
    %70 = arith.subf %64, %69 : vector<16x32xf32>
    %71 = arith.mulf %70, %70 : vector<16x32xf32>
    %cst_35 = arith.constant dense<0.000000e+00> : vector<16xf32>
    %72 = vector.multi_reduction <add>, %71, %cst_35 [1] : vector<16x32xf32> to vector<16xf32>
    %73 = vector.shape_cast %72 : vector<16xf32> to vector<16x1xf32>
    %cst_36 = arith.constant 3.200000e+01 : f32
    %74 = vector.broadcast %cst_36 : f32 to vector<16x1xf32>
    %75 = arith.divf %73, %74 : vector<16x1xf32>
    %76 = vector.extract_strided_slice %8 {offsets = [0, 0], sizes = [1, 32], strides = [1, 1]} : vector<3x32xf32> to vector<1x32xf32>
    %77 = vector.extract_strided_slice %9 {offsets = [0, 0], sizes = [1, 32], strides = [1, 1]} : vector<3x32xf32> to vector<1x32xf32>
    %78 = vector.broadcast %68 : vector<16x1xf32> to vector<16x32xf32>
    %79 = arith.subf %64, %78 : vector<16x32xf32>
    %cst_37 = arith.constant 9.99999974E-6 : f32
    %80 = vector.broadcast %cst_37 : f32 to vector<16x1xf32>
    %81 = arith.addf %75, %80 : vector<16x1xf32>
    %82 = math.rsqrt %81 : vector<16x1xf32>
    %83 = vector.broadcast %82 : vector<16x1xf32> to vector<16x32xf32>
    %84 = arith.mulf %79, %83 : vector<16x32xf32>
    %85 = vector.broadcast %76 : vector<1x32xf32> to vector<16x32xf32>
    %86 = arith.mulf %84, %85 : vector<16x32xf32>
    %87 = vector.broadcast %77 : vector<1x32xf32> to vector<16x32xf32>
    %88 = arith.addf %86, %87 : vector<16x32xf32>
    %89 = arith.addf %88, %3 : vector<16x32xf32>
    %c0_38 = arith.constant 0 : index
    %c0_39 = arith.constant 0 : index
    %90 = vector.load %arg11[%c0_38, %c0_39] : memref<32x32xf32, #tpu.memory_space<vmem>>, vector<32x32xf32>
    %cst_40 = arith.constant dense<0.000000e+00> : vector<16x32xf32>
    %91 = tpu.matmul %89, %90, %cst_40 {dimension_numbers = #tpu.dot_dimension_numbers<[1], [0], [0], [1], [0, 0, 1, 1], [], []>} : vector<16x32xf32>, vector<32x32xf32>, vector<16x32xf32> -> vector<16x32xf32>
    %c0_41 = arith.constant 0 : index
    %c0_42 = arith.constant 0 : index
    %92 = vector.load %arg12[%c0_41, %c0_42] : memref<1x32xf32, #tpu.memory_space<vmem>>, vector<1x32xf32>
    %93 = vector.broadcast %92 : vector<1x32xf32> to vector<16x32xf32>
    %94 = arith.addf %91, %93 : vector<16x32xf32>
    %95 = arith.addf %5, %7 : vector<32x32xf32>
    %c0_43 = arith.constant 0 : index
    %c0_44 = arith.constant 0 : index
    %96 = vector.load %arg13[%c0_43, %c0_44] : memref<32x32xf32, #tpu.memory_space<vmem>>, vector<32x32xf32>
    %cst_45 = arith.constant dense<0.000000e+00> : vector<32x32xf32>
    %97 = tpu.matmul %95, %96, %cst_45 {dimension_numbers = #tpu.dot_dimension_numbers<[1], [0], [0], [1], [0, 0, 1, 1], [], []>} : vector<32x32xf32>, vector<32x32xf32>, vector<32x32xf32> -> vector<32x32xf32>
    %c0_46 = arith.constant 0 : index
    %c0_47 = arith.constant 0 : index
    %98 = vector.load %arg14[%c0_46, %c0_47] : memref<1x32xf32, #tpu.memory_space<vmem>>, vector<1x32xf32>
    %99 = vector.broadcast %98 : vector<1x32xf32> to vector<32x32xf32>
    %100 = arith.addf %97, %99 : vector<32x32xf32>
    %c0_48 = arith.constant 0 : index
    %c0_49 = arith.constant 0 : index
    %101 = vector.load %arg15[%c0_48, %c0_49] : memref<32x32xf32, #tpu.memory_space<vmem>>, vector<32x32xf32>
    %cst_50 = arith.constant dense<0.000000e+00> : vector<32x32xf32>
    %102 = tpu.matmul %5, %101, %cst_50 {dimension_numbers = #tpu.dot_dimension_numbers<[1], [0], [0], [1], [0, 0, 1, 1], [], []>} : vector<32x32xf32>, vector<32x32xf32>, vector<32x32xf32> -> vector<32x32xf32>
    %c0_51 = arith.constant 0 : index
    %c0_52 = arith.constant 0 : index
    %103 = vector.load %arg16[%c0_51, %c0_52] : memref<1x32xf32, #tpu.memory_space<vmem>>, vector<1x32xf32>
    %104 = vector.broadcast %103 : vector<1x32xf32> to vector<32x32xf32>
    %105 = arith.addf %102, %104 : vector<32x32xf32>
    %106 = vector.shape_cast %94 : vector<16x32xf32> to vector<2x8x32xf32>
    %107 = vector.shape_cast %100 : vector<32x32xf32> to vector<2x16x32xf32>
    %108 = vector.shape_cast %105 : vector<32x32xf32> to vector<2x16x32xf32>
    %109 = vector.extract_strided_slice %106 {offsets = [0, 0, 0], sizes = [2, 8, 8], strides = [1, 1, 1]} : vector<2x8x32xf32> to vector<2x8x8xf32>
    %110 = vector.extract_strided_slice %106 {offsets = [0, 0, 8], sizes = [2, 8, 8], strides = [1, 1, 1]} : vector<2x8x32xf32> to vector<2x8x8xf32>
    %111 = vector.extract_strided_slice %106 {offsets = [0, 0, 16], sizes = [2, 8, 8], strides = [1, 1, 1]} : vector<2x8x32xf32> to vector<2x8x8xf32>
    %112 = vector.extract_strided_slice %106 {offsets = [0, 0, 24], sizes = [2, 8, 8], strides = [1, 1, 1]} : vector<2x8x32xf32> to vector<2x8x8xf32>
    %113 = tpu.concatenate %109, %110, %111, %112 in 0 : vector<2x8x8xf32>, vector<2x8x8xf32>, vector<2x8x8xf32>, vector<2x8x8xf32> -> vector<8x8x8xf32>
    %114 = vector.extract_strided_slice %107 {offsets = [0, 0, 0], sizes = [2, 16, 8], strides = [1, 1, 1]} : vector<2x16x32xf32> to vector<2x16x8xf32>
    %115 = vector.extract_strided_slice %107 {offsets = [0, 0, 8], sizes = [2, 16, 8], strides = [1, 1, 1]} : vector<2x16x32xf32> to vector<2x16x8xf32>
    %116 = vector.extract_strided_slice %107 {offsets = [0, 0, 16], sizes = [2, 16, 8], strides = [1, 1, 1]} : vector<2x16x32xf32> to vector<2x16x8xf32>
    %117 = vector.extract_strided_slice %107 {offsets = [0, 0, 24], sizes = [2, 16, 8], strides = [1, 1, 1]} : vector<2x16x32xf32> to vector<2x16x8xf32>
    %118 = tpu.concatenate %114, %115, %116, %117 in 0 : vector<2x16x8xf32>, vector<2x16x8xf32>, vector<2x16x8xf32>, vector<2x16x8xf32> -> vector<8x16x8xf32>
    %119 = vector.extract_strided_slice %108 {offsets = [0, 0, 0], sizes = [2, 16, 8], strides = [1, 1, 1]} : vector<2x16x32xf32> to vector<2x16x8xf32>
    %120 = vector.extract_strided_slice %108 {offsets = [0, 0, 8], sizes = [2, 16, 8], strides = [1, 1, 1]} : vector<2x16x32xf32> to vector<2x16x8xf32>
    %121 = vector.extract_strided_slice %108 {offsets = [0, 0, 16], sizes = [2, 16, 8], strides = [1, 1, 1]} : vector<2x16x32xf32> to vector<2x16x8xf32>
    %122 = vector.extract_strided_slice %108 {offsets = [0, 0, 24], sizes = [2, 16, 8], strides = [1, 1, 1]} : vector<2x16x32xf32> to vector<2x16x8xf32>
    %123 = tpu.concatenate %119, %120, %121, %122 in 0 : vector<2x16x8xf32>, vector<2x16x8xf32>, vector<2x16x8xf32>, vector<2x16x8xf32> -> vector<8x16x8xf32>
    "tpu.trace_start"() <{level = 10 : i32, message = "bld,bsd->bls"}> : () -> ()
    %cst_53 = arith.constant dense<0.000000e+00> : vector<8x8x16xf32>
    %124 = tpu.matmul %113, %118, %cst_53 {dimension_numbers = #tpu.dot_dimension_numbers<[2], [2], [1], [1], [0, 0, 0, 1, 1, 1], [0], [0]>} : vector<8x8x8xf32>, vector<8x16x8xf32>, vector<8x8x16xf32> -> vector<8x8x16xf32>
    "tpu.trace_stop"() : () -> ()
    %cst_54 = arith.constant dense<0xFF800000> : vector<8x8xf32>
    %125 = vector.multi_reduction <maximumf>, %124, %cst_54 [2] : vector<8x8x16xf32> to vector<8x8xf32>
    %126 = vector.shape_cast %125 : vector<8x8xf32> to vector<8x8x1xf32>
    %127 = vector.broadcast %126 : vector<8x8x1xf32> to vector<8x8x16xf32>
    %128 = arith.subf %124, %127 : vector<8x8x16xf32>
    %129 = math.exp %128 : vector<8x8x16xf32>
    %cst_55 = arith.constant dense<0.000000e+00> : vector<8x8xf32>
    %130 = vector.multi_reduction <add>, %129, %cst_55 [2] : vector<8x8x16xf32> to vector<8x8xf32>
    %131 = vector.shape_cast %130 : vector<8x8xf32> to vector<8x8x1xf32>
    %132 = tpu.reciprocal %131 : vector<8x8x1xf32> -> vector<8x8x1xf32>
    %133 = vector.broadcast %132 : vector<8x8x1xf32> to vector<8x8x16xf32>
    %134 = arith.mulf %129, %133 : vector<8x8x16xf32>
    "tpu.trace_start"() <{level = 10 : i32, message = "bls,bsd->bld"}> : () -> ()
    %cst_56 = arith.constant dense<0.000000e+00> : vector<8x8x8xf32>
    %135 = tpu.matmul %134, %123, %cst_56 {dimension_numbers = #tpu.dot_dimension_numbers<[2], [1], [1], [2], [0, 0, 0, 1, 1, 2], [0], [0]>} : vector<8x8x16xf32>, vector<8x16x8xf32>, vector<8x8x8xf32> -> vector<8x8x8xf32>
    "tpu.trace_stop"() : () -> ()
    %136 = vector.extract_strided_slice %135 {offsets = [0, 0, 0], sizes = [2, 8, 8], strides = [1, 1, 1]} : vector<8x8x8xf32> to vector<2x8x8xf32>
    %137 = vector.extract_strided_slice %135 {offsets = [2, 0, 0], sizes = [2, 8, 8], strides = [1, 1, 1]} : vector<8x8x8xf32> to vector<2x8x8xf32>
    %138 = vector.extract_strided_slice %135 {offsets = [4, 0, 0], sizes = [2, 8, 8], strides = [1, 1, 1]} : vector<8x8x8xf32> to vector<2x8x8xf32>
    %139 = vector.extract_strided_slice %135 {offsets = [6, 0, 0], sizes = [2, 8, 8], strides = [1, 1, 1]} : vector<8x8x8xf32> to vector<2x8x8xf32>
    %140 = tpu.concatenate %136, %137, %138, %139 in 2 : vector<2x8x8xf32>, vector<2x8x8xf32>, vector<2x8x8xf32>, vector<2x8x8xf32> -> vector<2x8x32xf32>
    %141 = vector.shape_cast %140 : vector<2x8x32xf32> to vector<16x32xf32>
    %c0_57 = arith.constant 0 : index
    %c0_58 = arith.constant 0 : index
    %142 = vector.load %arg17[%c0_57, %c0_58] : memref<32x32xf32, #tpu.memory_space<vmem>>, vector<32x32xf32>
    %cst_59 = arith.constant dense<0.000000e+00> : vector<16x32xf32>
    %143 = tpu.matmul %141, %142, %cst_59 {dimension_numbers = #tpu.dot_dimension_numbers<[1], [0], [0], [1], [0, 0, 1, 1], [], []>} : vector<16x32xf32>, vector<32x32xf32>, vector<16x32xf32> -> vector<16x32xf32>
    %c0_60 = arith.constant 0 : index
    %c0_61 = arith.constant 0 : index
    %144 = vector.load %arg18[%c0_60, %c0_61] : memref<1x32xf32, #tpu.memory_space<vmem>>, vector<1x32xf32>
    %145 = vector.broadcast %144 : vector<1x32xf32> to vector<16x32xf32>
    %146 = arith.addf %143, %145 : vector<16x32xf32>
    %147 = arith.addf %88, %146 : vector<16x32xf32>
    %cst_62 = arith.constant dense<0.000000e+00> : vector<16xf32>
    %148 = vector.multi_reduction <add>, %147, %cst_62 [1] : vector<16x32xf32> to vector<16xf32>
    %149 = vector.shape_cast %148 : vector<16xf32> to vector<16x1xf32>
    %cst_63 = arith.constant 3.200000e+01 : f32
    %150 = vector.broadcast %cst_63 : f32 to vector<16x1xf32>
    %151 = arith.divf %149, %150 : vector<16x1xf32>
    %152 = vector.broadcast %151 : vector<16x1xf32> to vector<16x32xf32>
    %153 = arith.subf %147, %152 : vector<16x32xf32>
    %154 = arith.mulf %153, %153 : vector<16x32xf32>
    %cst_64 = arith.constant dense<0.000000e+00> : vector<16xf32>
    %155 = vector.multi_reduction <add>, %154, %cst_64 [1] : vector<16x32xf32> to vector<16xf32>
    %156 = vector.shape_cast %155 : vector<16xf32> to vector<16x1xf32>
    %cst_65 = arith.constant 3.200000e+01 : f32
    %157 = vector.broadcast %cst_65 : f32 to vector<16x1xf32>
    %158 = arith.divf %156, %157 : vector<16x1xf32>
    %159 = vector.extract_strided_slice %8 {offsets = [1, 0], sizes = [1, 32], strides = [1, 1]} : vector<3x32xf32> to vector<1x32xf32>
    %160 = vector.extract_strided_slice %9 {offsets = [1, 0], sizes = [1, 32], strides = [1, 1]} : vector<3x32xf32> to vector<1x32xf32>
    %161 = vector.broadcast %151 : vector<16x1xf32> to vector<16x32xf32>
    %162 = arith.subf %147, %161 : vector<16x32xf32>
    %cst_66 = arith.constant 9.99999974E-6 : f32
    %163 = vector.broadcast %cst_66 : f32 to vector<16x1xf32>
    %164 = arith.addf %158, %163 : vector<16x1xf32>
    %165 = math.rsqrt %164 : vector<16x1xf32>
    %166 = vector.broadcast %165 : vector<16x1xf32> to vector<16x32xf32>
    %167 = arith.mulf %162, %166 : vector<16x32xf32>
    %168 = vector.broadcast %159 : vector<1x32xf32> to vector<16x32xf32>
    %169 = arith.mulf %167, %168 : vector<16x32xf32>
    %170 = vector.broadcast %160 : vector<1x32xf32> to vector<16x32xf32>
    %171 = arith.addf %169, %170 : vector<16x32xf32>
    %c0_67 = arith.constant 0 : index
    %c0_68 = arith.constant 0 : index
    %172 = vector.load %arg19[%c0_67, %c0_68] : memref<32x64xf32, #tpu.memory_space<vmem>>, vector<32x64xf32>
    %cst_69 = arith.constant dense<0.000000e+00> : vector<16x64xf32>
    %173 = tpu.matmul %171, %172, %cst_69 {dimension_numbers = #tpu.dot_dimension_numbers<[1], [0], [0], [1], [0, 0, 1, 1], [], []>} : vector<16x32xf32>, vector<32x64xf32>, vector<16x64xf32> -> vector<16x64xf32>
    %c0_70 = arith.constant 0 : index
    %c0_71 = arith.constant 0 : index
    %174 = vector.load %arg20[%c0_70, %c0_71] : memref<1x64xf32, #tpu.memory_space<vmem>>, vector<1x64xf32>
    %175 = vector.broadcast %174 : vector<1x64xf32> to vector<16x64xf32>
    %176 = arith.addf %173, %175 : vector<16x64xf32>
    %cst_72 = arith.constant 0.000000e+00 : f32
    %177 = vector.broadcast %cst_72 : f32 to vector<16x64xf32>
    %178 = arith.maximumf %176, %177 : vector<16x64xf32>
    %c0_73 = arith.constant 0 : index
    %c0_74 = arith.constant 0 : index
    %179 = vector.load %arg21[%c0_73, %c0_74] : memref<64x32xf32, #tpu.memory_space<vmem>>, vector<64x32xf32>
    %cst_75 = arith.constant dense<0.000000e+00> : vector<16x32xf32>
    %180 = tpu.matmul %178, %179, %cst_75 {dimension_numbers = #tpu.dot_dimension_numbers<[1], [0], [0], [1], [0, 0, 1, 1], [], []>} : vector<16x64xf32>, vector<64x32xf32>, vector<16x32xf32> -> vector<16x32xf32>
    %c0_76 = arith.constant 0 : index
    %c0_77 = arith.constant 0 : index
    %181 = vector.load %arg22[%c0_76, %c0_77] : memref<1x32xf32, #tpu.memory_space<vmem>>, vector<1x32xf32>
    %182 = vector.broadcast %181 : vector<1x32xf32> to vector<16x32xf32>
    %183 = arith.addf %180, %182 : vector<16x32xf32>
    %184 = arith.addf %171, %183 : vector<16x32xf32>
    %cst_78 = arith.constant dense<0.000000e+00> : vector<16xf32>
    %185 = vector.multi_reduction <add>, %184, %cst_78 [1] : vector<16x32xf32> to vector<16xf32>
    %186 = vector.shape_cast %185 : vector<16xf32> to vector<16x1xf32>
    %cst_79 = arith.constant 3.200000e+01 : f32
    %187 = vector.broadcast %cst_79 : f32 to vector<16x1xf32>
    %188 = arith.divf %186, %187 : vector<16x1xf32>
    %189 = vector.broadcast %188 : vector<16x1xf32> to vector<16x32xf32>
    %190 = arith.subf %184, %189 : vector<16x32xf32>
    %191 = arith.mulf %190, %190 : vector<16x32xf32>
    %cst_80 = arith.constant dense<0.000000e+00> : vector<16xf32>
    %192 = vector.multi_reduction <add>, %191, %cst_80 [1] : vector<16x32xf32> to vector<16xf32>
    %193 = vector.shape_cast %192 : vector<16xf32> to vector<16x1xf32>
    %cst_81 = arith.constant 3.200000e+01 : f32
    %194 = vector.broadcast %cst_81 : f32 to vector<16x1xf32>
    %195 = arith.divf %193, %194 : vector<16x1xf32>
    %196 = vector.extract_strided_slice %8 {offsets = [2, 0], sizes = [1, 32], strides = [1, 1]} : vector<3x32xf32> to vector<1x32xf32>
    %197 = vector.extract_strided_slice %9 {offsets = [2, 0], sizes = [1, 32], strides = [1, 1]} : vector<3x32xf32> to vector<1x32xf32>
    %198 = vector.broadcast %188 : vector<16x1xf32> to vector<16x32xf32>
    %199 = arith.subf %184, %198 : vector<16x32xf32>
    %cst_82 = arith.constant 9.99999974E-6 : f32
    %200 = vector.broadcast %cst_82 : f32 to vector<16x1xf32>
    %201 = arith.addf %195, %200 : vector<16x1xf32>
    %202 = math.rsqrt %201 : vector<16x1xf32>
    %203 = vector.broadcast %202 : vector<16x1xf32> to vector<16x32xf32>
    %204 = arith.mulf %199, %203 : vector<16x32xf32>
    %205 = vector.broadcast %196 : vector<1x32xf32> to vector<16x32xf32>
    %206 = arith.mulf %204, %205 : vector<16x32xf32>
    %207 = vector.broadcast %197 : vector<1x32xf32> to vector<16x32xf32>
    %208 = arith.addf %206, %207 : vector<16x32xf32>
    %209 = vector.shape_cast %208 : vector<16x32xf32> to vector<2x8x32xf32>
    %c0_83 = arith.constant 0 : index
    %c0_84 = arith.constant 0 : index
    %c0_85 = arith.constant 0 : index
    %210 = vector.load %arg25[%c0_83, %c0_84, %c0_85] : memref<2x8x32xf32, #tpu.memory_space<vmem>>, vector<2x8x32xf32>
    tpu.vector_store %arg25[%c0_83, %c0_84, %c0_85], %209 {strides = array<i32>} : memref<2x8x32xf32, #tpu.memory_space<vmem>>, vector<2x8x32xf32>,
    return
  }
  func.func @transform_0(%arg0: i32) -> (i32, i32, i32) {
    %c0_i32 = arith.constant 0 : i32
    %c0_i32_0 = arith.constant 0 : i32
    %c0_i32_1 = arith.constant 0 : i32
    return %arg0, %c0_i32, %c0_i32_0 : i32, i32, i32
  }
  func.func @transform_1(%arg0: i32) -> (i32, i32, i32) {
    %c0_i32 = arith.constant 0 : i32
    %c0_i32_0 = arith.constant 0 : i32
    %c0_i32_1 = arith.constant 0 : i32
    return %arg0, %c0_i32, %c0_i32_0 : i32, i32, i32
  }
  func.func @transform_2(%arg0: i32) -> (i32, i32, i32) {
    %c0_i32 = arith.constant 0 : i32
    %c0_i32_0 = arith.constant 0 : i32
    %c0_i32_1 = arith.constant 0 : i32
    return %arg0, %c0_i32, %c0_i32_0 : i32, i32, i32
  }
  func.func @transform_3(%arg0: i32) -> (i32, i32, i32) {
    %c0_i32 = arith.constant 0 : i32
    %c0_i32_0 = arith.constant 0 : i32
    %c0_i32_1 = arith.constant 0 : i32
    return %arg0, %c0_i32, %c0_i32_0 : i32, i32, i32
  }
  func.func @transform_4(%arg0: i32) -> (i32, i32) {
    %c0_i32 = arith.constant 0 : i32
    %c0_i32_0 = arith.constant 0 : i32
    %c0_i32_1 = arith.constant 0 : i32
    return %c0_i32, %c0_i32_0 : i32, i32
  }
  func.func @transform_5(%arg0: i32) -> (i32, i32) {
    %c0_i32 = arith.constant 0 : i32
    %c0_i32_0 = arith.constant 0 : i32
    %c0_i32_1 = arith.constant 0 : i32
    return %c0_i32, %c0_i32_0 : i32, i32
  }
  func.func @transform_6(%arg0: i32) -> (i32, i32) {
    %c0_i32 = arith.constant 0 : i32
    %c0_i32_0 = arith.constant 0 : i32
    %c0_i32_1 = arith.constant 0 : i32
    return %c0_i32, %c0_i32_0 : i32, i32
  }
  func.func @transform_7(%arg0: i32) -> (i32, i32) {
    %c0_i32 = arith.constant 0 : i32
    %c0_i32_0 = arith.constant 0 : i32
    %c0_i32_1 = arith.constant 0 : i32
    return %c0_i32, %c0_i32_0 : i32, i32
  }
  func.func @transform_8(%arg0: i32) -> (i32, i32) {
    %c0_i32 = arith.constant 0 : i32
    %c0_i32_0 = arith.constant 0 : i32
    %c0_i32_1 = arith.constant 0 : i32
    return %c0_i32, %c0_i32_0 : i32, i32
  }
  func.func @transform_9(%arg0: i32) -> (i32, i32) {
    %c0_i32 = arith.constant 0 : i32
    %c0_i32_0 = arith.constant 0 : i32
    %c0_i32_1 = arith.constant 0 : i32
    return %c0_i32, %c0_i32_0 : i32, i32
  }
  func.func @transform_10(%arg0: i32) -> (i32, i32) {
    %c0_i32 = arith.constant 0 : i32
    %c0_i32_0 = arith.constant 0 : i32
    %c0_i32_1 = arith.constant 0 : i32
    return %c0_i32, %c0_i32_0 : i32, i32
  }
  func.func @transform_11(%arg0: i32) -> (i32, i32) {
    %c0_i32 = arith.constant 0 : i32
    %c0_i32_0 = arith.constant 0 : i32
    %c0_i32_1 = arith.constant 0 : i32
    return %c0_i32, %c0_i32_0 : i32, i32
  }
  func.func @transform_12(%arg0: i32) -> (i32, i32) {
    %c0_i32 = arith.constant 0 : i32
    %c0_i32_0 = arith.constant 0 : i32
    %c0_i32_1 = arith.constant 0 : i32
    return %c0_i32, %c0_i32_0 : i32, i32
  }
  func.func @transform_13(%arg0: i32) -> (i32, i32) {
    %c0_i32 = arith.constant 0 : i32
    %c0_i32_0 = arith.constant 0 : i32
    %c0_i32_1 = arith.constant 0 : i32
    return %c0_i32, %c0_i32_0 : i32, i32
  }
  func.func @transform_14(%arg0: i32) -> (i32, i32) {
    %c0_i32 = arith.constant 0 : i32
    %c0_i32_0 = arith.constant 0 : i32
    %c0_i32_1 = arith.constant 0 : i32
    return %c0_i32, %c0_i32_0 : i32, i32
  }
  func.func @transform_15(%arg0: i32) -> (i32, i32) {
    %c0_i32 = arith.constant 0 : i32
    %c0_i32_0 = arith.constant 0 : i32
    %c0_i32_1 = arith.constant 0 : i32
    return %c0_i32, %c0_i32_0 : i32, i32
  }
  func.func @transform_16(%arg0: i32) -> (i32, i32) {
    %c0_i32 = arith.constant 0 : i32
    %c0_i32_0 = arith.constant 0 : i32
    %c0_i32_1 = arith.constant 0 : i32
    return %c0_i32, %c0_i32_0 : i32, i32
  }
  func.func @transform_17(%arg0: i32) -> (i32, i32) {
    %c0_i32 = arith.constant 0 : i32
    %c0_i32_0 = arith.constant 0 : i32
    %c0_i32_1 = arith.constant 0 : i32
    return %c0_i32, %c0_i32_0 : i32, i32
  }
  func.func @transform_18(%arg0: i32) -> (i32, i32) {
    %c0_i32 = arith.constant 0 : i32
    %c0_i32_0 = arith.constant 0 : i32
    %c0_i32_1 = arith.constant 0 : i32
    return %c0_i32, %c0_i32_0 : i32, i32
  }
  func.func @transform_19(%arg0: i32) -> (i32, i32) {
    %c0_i32 = arith.constant 0 : i32
    %c0_i32_0 = arith.constant 0 : i32
    %c0_i32_1 = arith.constant 0 : i32
    return %c0_i32, %c0_i32_0 : i32, i32
  }
  func.func @transform_20(%arg0: i32) -> (i32, i32) {
    %c0_i32 = arith.constant 0 : i32
    %c0_i32_0 = arith.constant 0 : i32
    %c0_i32_1 = arith.constant 0 : i32
    return %c0_i32, %c0_i32_0 : i32, i32
  }
  func.func @transform_21(%arg0: i32) -> (i32, i32) {
    %c0_i32 = arith.constant 0 : i32
    %c0_i32_0 = arith.constant 0 : i32
    %c0_i32_1 = arith.constant 0 : i32
    return %c0_i32, %c0_i32_0 : i32, i32
  }
  func.func @transform_22(%arg0: i32) -> (i32, i32) {
    %c0_i32 = arith.constant 0 : i32
    %c0_i32_0 = arith.constant 0 : i32
    %c0_i32_1 = arith.constant 0 : i32
    return %c0_i32, %c0_i32_0 : i32, i32
  }
  func.func @transform_23(%arg0: i32) -> (i32, i32) {
    %c0_i32 = arith.constant 0 : i32
    %c0_i32_0 = arith.constant 0 : i32
    %c0_i32_1 = arith.constant 0 : i32
    return %c0_i32, %c0_i32_0 : i32, i32
  }
  func.func @transform_24(%arg0: i32) -> (i32, i32, i32) {
    %c0_i32 = arith.constant 0 : i32
    %c0_i32_0 = arith.constant 0 : i32
    %c0_i32_1 = arith.constant 0 : i32
    return %arg0, %c0_i32, %c0_i32_0 : i32, i32, i32
  }
}

</mosaic_0001>

<bundles_post_ra>
// kernel: tpu_custom_call.1
= control target key start
LH: loop header
LB: loop body
LE: loop exit
PB: predicated region body
PF: predicated region fallthrough
CT: control target
= control target key end

     0   :  { %s4991_s0 = inlined_call_operand.vmem [shape: f32[4,8,32], index: 0, kind: input, shape index: {}]   ;;  %s4992_s1 = inlined_call_operand.vmem [shape: f32[4,16,32], index: 1, kind: input, shape index: {}]   ;;  %s4993_s2 = inlined_call_operand.hbm [shape: f32[4,8,32], index: 2, kind: input, shape index: {}]   ;;  %s4994_s3 = inlined_call_operand.hbm [shape: f32[4,16,32], index: 3, kind: input, shape index: {}]   ;;  %s4995_s4 = inlined_call_operand.hbm [shape: f32[32,64], index: 4, kind: input, shape index: {}]   ;;  %s4996_s5 = inlined_call_operand.vmem [shape: f32[1,64], index: 5, kind: input, shape index: {}]   ;;  %s4997_s6 = inlined_call_operand.hbm [shape: f32[32,32], index: 6, kind: input, shape index: {}]   ;;  %s4998_s7 = inlined_call_operand.hbm [shape: f32[1,32], index: 7, kind: input, shape index: {}]   ;;  %s4999_s8 = inlined_call_operand.hbm [shape: f32[32,32], index: 8, kind: input, shape index: {}]   ;;  %s5000_s9 = inlined_call_operand.hbm [shape: f32[1,32], index: 9, kind: input, shape index: {}]   ;;  %s5001_s10 = inlined_call_operand.hbm [shape: f32[32,32], index: 10, kind: input, shape index: {}]   ;;  %s5002_s11 = inlined_call_operand.hbm [shape: f32[1,32], index: 11, kind: input, shape index: {}]   ;;  %s5003_s12 = inlined_call_operand.hbm [shape: f32[32,32], index: 12, kind: input, shape index: {}]   ;;  %s5004_s13 = inlined_call_operand.vmem [shape: f32[1,32], index: 13, kind: input, shape index: {}]   ;;  %s5005_s14 = inlined_call_operand.hbm [shape: f32[32,32], index: 14, kind: input, shape index: {}]   ;;  %s5006_s15 = inlined_call_operand.vmem [shape: f32[1,32], index: 15, kind: input, shape index: {}]   ;;  %s5007_s16 = inlined_call_operand.hbm [shape: f32[32,32], index: 16, kind: input, shape index: {}]   ;;  %s5008_s17 = inlined_call_operand.vmem [shape: f32[1,32], index: 17, kind: input, shape index: {}]   ;;  %s5009_s18 = inlined_call_operand.hbm [shape: f32[32,64], index: 18, kind: input, shape index: {}]   ;;  %s5010_s19 = inlined_call_operand.vmem [shape: f32[1,64], index: 19, kind: input, shape index: {}]   ;;  %s5011_s20 = inlined_call_operand.vmem [shape: f32[64,32], index: 20, kind: input, shape index: {}]   ;;  %s5012_s21 = inlined_call_operand.vmem [shape: f32[1,32], index: 21, kind: input, shape index: {}]   ;;  %s5013_s22 = inlined_call_operand.vmem [shape: f32[3,32], index: 22, kind: input, shape index: {}]   ;;  %s5014_s23 = inlined_call_operand.vmem [shape: f32[3,32], index: 23, kind: input, shape index: {}]   ;;  %s5015_s24 = inlined_call_operand.hbm [shape: f32[4,8,32], index: 24, kind: output, shape index: {}]  }
   0x1   :  { %5027 = sst [smem:[#allocation36_spill]] %s4991_s0 }
   0x2   :  { %5028 = sst [smem:[#allocation37_spill]] %s4992_s1 }
   0x3   :  { %5029 = sst [smem:[#allocation38_spill]] %s4993_s2 }
   0x4   :  { %5030 = sst [smem:[#allocation39_spill]] %s4994_s3 }
   0x5   :  { %5031 = sst [smem:[#allocation40_spill]] %s4995_s4 }
   0x6   :  { %5032 = sst [smem:[#allocation41_spill]] %s4996_s5 }
   0x7   :  { %5033 = sst [smem:[#allocation42_spill]] %s4997_s6 }
   0x8   :  { %5034 = sst [smem:[#allocation43_spill]] %s4998_s7 }
   0x9   :  { %5035 = sst [smem:[#allocation44_spill]] %s4999_s8 }
   0xa   :  { %5036 = sst [smem:[#allocation45_spill]] %s5000_s9 }
   0xb   :  { %5037 = sst [smem:[#allocation46_spill]] %s5001_s10 }
   0xc   :  { %5038 = sst [smem:[#allocation47_spill]] %s5002_s11 }
   0xd   :  { %5039 = sst [smem:[#allocation48_spill]] %s5003_s12 }
   0xe   :  { %5040 = sst [smem:[#allocation49_spill]] %s5005_s14 }
   0xf   :  { %5041 = sst [smem:[#allocation50_spill]] %s5006_s15 }
  0x10   :  { %5042 = sst [smem:[#allocation51_spill]] %s5007_s16 }
  0x11   :  { %5043 = sst [smem:[#allocation52_spill]] %s5008_s17 }
  0x12   :  { %5044 = sst [smem:[#allocation53_spill]] %s5009_s18 }
  0x13   :  { %5045 = sst [smem:[#allocation54_spill]] %s5010_s19 }
  0x14   :  { %5046 = sst [smem:[#allocation55_spill]] %s5011_s20 }
  0x15   :  { %5047 = sst [smem:[#allocation56_spill]] %s5012_s21 }
  0x16   :  { %5048 = sst [smem:[#allocation57_spill]] %s5015_s24 }
  0x17   :  { %29 = vsyncpa [#allocation3], 0 }
  0x18   :  { %31 = vsyncpa [#allocation3 + $0x1], 0 }
  0x19   :  { %32 = vsyncpa [#allocation6], 0 }
  0x1a   :  { %34 = vsyncpa [#allocation6 + $0x1], 0 }
  0x1b   :  { %35 = vsyncpa [#allocation9], 0 }
  0x1c   :  { %36 = vsyncpa [#allocation12], 0 }
  0x1d   :  { %37 = vsyncpa [#allocation15], 0 }
  0x1e   :  { %38 = vsyncpa [#allocation18], 0 }
  0x1f   :  { %39 = vsyncpa [#allocation21], 0 }
  0x20   :  { %40 = vsyncpa [#allocation4], 0 }
  0x21   :  { %42 = vsyncpa [#allocation4 + $0x1], 0  ;;  %s4219_s5 = smov 0   ;;  %s4221_s26 = smov 0  }
  0x22   :  { %s4223_s27 = smov 0   ;;  %s4225_s28 = smov 0  }
  0x23 LB: > { %5049 = sst [smem:[#allocation33_spill]] %s4066_s27  ;;  %s4243_s7 = sadd.s32 4294967295, %s4070_s28   ;;  %s4070_s28 = sphi %s4225_s28, %s5088_s28   ;;  %s4066_s27 = sphi %s4223_s27, %s5090_s27   ;;  %s4062_s26 = sphi %s4221_s26, %s5092_s26   ;;  %s4058_s5 = sphi %s4219_s5, %s5091_s5  }
  0x24   : > { %s5050_s29 = sld [smem:[#allocation40_spill]]  ;;  %p3166_p0 = scmp.ge.s32.totalorder %s4070_s28, 1 }
  0x25   : > { %p121_p1 = scmp.eq.s32.totalorder %s4243_s7, 0  ;;  %p603_p2 = scmp.lt.s32.totalorder %s4070_s28, 3 }
  0x26   : > { %s4072_s3 = smov [#allocation7]   ;;  %s5052_s1 = sld [smem:[#allocation42_spill]] }
  0x27   : > { %p4248_p3 = pnand %p3166_p0, %p603_p2  ;;  %s616_s25 = sshll.u32 %s4072_s3, 4  ;;  %s617_s25 = int_to_ptr.vmem [resolvable:$true] %s616_s25 }
  0x28   : > { %s5054_s3 = sld [smem:[#allocation44_spill]]  ;;  %s4073_s19 = smov [#allocation8]  }
  0x29   : > { %p3344_p4 = pneg %p4248_p3  ;;  %s633_s20 = sshll.u32 %s4073_s19, 4  ;;  %s634_s20 = int_to_ptr.vmem [resolvable:$true] %s633_s20 }
  0x2a   : > { %s614_s0 = sshll.u32 %s5050_s29, 4  ;;  %s5020_s17 = smov 128   ;;  %s615_s0 = int_to_ptr.hbm [resolvable:$true] %s614_s0 }
  0x2b   : > { %p4260_p6 = pnand %p3344_p4, %p121_p1  ;;  %s5022_s15 = smov 8  }
  0x2c   : > { %s631_s6 = sshll.u32 %s5052_s1, 4  ;;  %s5055_s10 = sld [smem:[#allocation46_spill]]  ;;  %s632_s6 = int_to_ptr.hbm [resolvable:$true] %s631_s6 }
  0x2d   : > { %3347 = dma.hbm_to_vmem [thread:$0]  (!%p4260_p6), %s615_s0, 512, %s617_s25, [#allocation6], %s5020_s17, %s5020_s17, %s5022_s15  }
  0x2e   : > { %s657_s21 = sshll.u32 %s5054_s3, 4  ;;  %s4076_s19 = smov [#allocation11]   ;;  %s658_s21 = int_to_ptr.hbm [resolvable:$true] %s657_s21 }
  0x2f   : > { %3350 = dma.hbm_to_vmem [thread:$0]  (!%p4260_p6), %s632_s6, 512, %s634_s20, [#allocation9], %s5020_s17, %s5020_s17, %s5022_s15  }
  0x30   : > { %s659_s1 = sshll.u32 %s4076_s19, 4  ;;  %s4077_s0 = smov [#allocation14]   ;;  %s660_s1 = int_to_ptr.vmem [resolvable:$true] %s659_s1 }
  0x31   : > { %3356 = dma.hbm_to_vmem [thread:$0]  (!%p4260_p6), %s658_s21, 512, %s660_s1, [#allocation12], %s5020_s17, %s5020_s17, %s5022_s15  }
  0x32   : > { %s683_s4 = sshll.u32 %s5055_s10, 4  ;;  %s685_s25 = sshll.u32 %s4077_s0, 4  ;;  %s684_s4 = int_to_ptr.hbm [resolvable:$true] %s683_s4  ;;  %s686_s25 = int_to_ptr.vmem [resolvable:$true] %s685_s25 }
  0x33   : > { %s5056_s12 = sld [smem:[#allocation48_spill]]  ;;  %s4078_s19 = smov [#allocation17]  }
  0x34   : > { %3362 = dma.hbm_to_vmem [thread:$0]  (!%p4260_p6), %s684_s4, 512, %s686_s25, [#allocation15], %s5020_s17, %s5020_s17, %s5022_s15  }
  0x35   : > { %s5057_s16 = sld [smem:[#allocation51_spill]]  ;;  %s711_s21 = sshll.u32 %s4078_s19, 4  ;;  %s712_s21 = int_to_ptr.vmem [resolvable:$true] %s711_s21 }
  0x36   : > { %s4079_s1 = smov [#allocation20]   ;;  %s5058_s10 = sld [smem:[#allocation43_spill]] }
  0x37   : > { %s745_s0 = sshll.u32 %s4079_s1, 4  ;;  %s5059_s9 = sld [smem:[#allocation45_spill]]  ;;  %s746_s0 = int_to_ptr.vmem [resolvable:$true] %s745_s0 }
  0x38   : > { %s4080_s19 = smov [#allocation10]   ;;  %s5060_s11 = sld [smem:[#allocation47_spill]] }
  0x39   : > { %s709_s20 = sshll.u32 %s5056_s12, 4  ;;  %s5061_s14 = sld [smem:[#allocation49_spill]]  ;;  %s710_s20 = int_to_ptr.hbm [resolvable:$true] %s709_s20 }
  0x3a   : > { %3368 = dma.hbm_to_vmem [thread:$0]  (!%p4260_p6), %s710_s20, 512, %s712_s21, [#allocation18], %s5020_s17, %s5020_s17, %s5022_s15  }
  0x3b   : > { %s743_s24 = sshll.u32 %s5057_s16, 4  ;;  %s648_s20 = sshll.u32 %s4080_s19, 4  ;;  %s744_s24 = int_to_ptr.hbm [resolvable:$true] %s743_s24  ;;  %s649_s20 = int_to_ptr.vmem [resolvable:$true] %s648_s20 }
  0x3c   : > { %s646_s4 = sshll.u32 %s5058_s10, 4  ;;  %s4081_s21 = smov [#allocation13]   ;;  %s647_s4 = int_to_ptr.hbm [resolvable:$true] %s646_s4 }
  0x3d   : > { %3374 = dma.hbm_to_vmem [thread:$0]  (!%p4260_p6), %s744_s24, 512, %s746_s0, [#allocation21], %s5020_s17, %s5020_s17, %s5022_s15  }
  0x3e   : > { %s672_s8 = sshll.u32 %s5059_s9, 4  ;;  %s674_s10 = sshll.u32 %s4081_s21, 4  ;;  %s673_s8 = int_to_ptr.hbm [resolvable:$true] %s672_s8  ;;  %s675_s10 = int_to_ptr.vmem [resolvable:$true] %s674_s10 }
  0x3f   : > { %3353 = dma.hbm_to_vmem [thread:$0]  (!%p4260_p6), %s647_s4, 16, %s649_s20, [#allocation9]  }
  0x40   : > { %s698_s3 = sshll.u32 %s5060_s11, 4  ;;  %s726_s25 = sshll.u32 %s5061_s14, 4  ;;  %s699_s3 = int_to_ptr.hbm [resolvable:$true] %s698_s3  ;;  %s727_s25 = int_to_ptr.hbm [resolvable:$true] %s726_s25 }
  0x41   : > { %3359 = dma.hbm_to_vmem [thread:$0]  (!%p4260_p6), %s673_s8, 16, %s675_s10, [#allocation12]  }
  0x42   : > { %s4082_s6 = smov [#allocation16]   ;;  %s4083_s19 = smov [#allocation19]  }
  0x43   : > { %s700_s4 = sshll.u32 %s4082_s6, 4  ;;  %s728_s8 = sshll.u32 %s4083_s19, 4  ;;  %s701_s4 = int_to_ptr.vmem [resolvable:$true] %s700_s4  ;;  %s729_s8 = int_to_ptr.vmem [resolvable:$true] %s728_s8 }
  0x44   : > { %3365 = dma.hbm_to_vmem [thread:$0]  (!%p4260_p6), %s699_s3, 16, %s701_s4, [#allocation15]  }
  0x45   : > { %s5062_s18 = sld [smem:[#allocation53_spill]]  ;;  %s4084_s1 = smov [#allocation22]  }
  0x46   : > { %3371 = dma.hbm_to_vmem [thread:$0]  (!%p4260_p6), %s727_s25, 512, %s729_s8, [#allocation18], %s5020_s17, %s5020_s17, %s5022_s15  }
  0x47   : > { %s762_s29 = sshll.u32 %s4084_s1, 4  ;;  %s3165_s3 = sadd.s32 4294967294, %s4070_s28   ;;  %s763_s29 = int_to_ptr.vmem [resolvable:$true] %s762_s29 }
  0x48   : > { %s4339_s24 = sadd.s32 1, %s4070_s28   ;;  %s107_s0 = sadd.s32 1, %s4066_s27 }
  0x49   : > { %5063 = sst [smem:[#allocation34_spill]] %s4339_s24  ;;  %s104_s6 = ssub.s32 %s4070_s28, %s4339_s24 }
  0x4a   : > { %p114_p7 = scmp.ne.s32.totalorder %s4066_s27, %s4062_s26  ;;  %p105_p8 = scmp.eq.s32.totalorder %s104_s6, 0 }
  0x4b   : > { %s760_s10 = sshll.u32 %s5062_s18, 4  ;;  %p115_p9 = scmp.eq.s32.totalorder %s4070_s28, 0  ;;  %s761_s10 = int_to_ptr.hbm [resolvable:$true] %s760_s10 }
  0x4c   : > { %3377 = dma.hbm_to_vmem [thread:$0]  (!%p4260_p6), %s761_s10, 512, %s763_s29, [#allocation21], %s5020_s17, %s5020_s17, %s5022_s15  }
  0x4d   : > { %p120_p10 = scmp.ne.s32.totalorder %s4062_s26, %s4058_s5  ;;  %p590_p11 = scmp.eq.s32.totalorder %s4243_s7, 1 }
  0x4e   : > { %s4351_s25 = scalar_select %p105_p8, %s4066_s27, %s107_s0  }
  0x4f   : > { %p4353_p12 = por %p115_p9, %p114_p7  ;;  %p4359_p13 = por %p121_p1, %p120_p10 }
  0x50   : > { %5064 = sst [smem:[#allocation35_spill]] %s4351_s25  ;;  %p4363_p0 = por %p590_p11, %p114_p7 }
  0x51   : > { %p596_p2 = scmp.eq.s32.totalorder %s3165_s3, 1  ;;  %p3400_p4 = scmp.lt.s32.totalorder %s4070_s28, 2 }
  0x52   : > { %s4369_s8 = sand.u32 1, %s4066_s27   ;;  %s3289_s10 = sshll.u32 %s4070_s28, 4 }
  0x53   : > { %p4371_p6 = por %p596_p2, %p120_p10  ;;  %s3179_s21 = sshll.u32 %s4369_s8, 4 }
  0x54   : > { %s5069_s0 = sld [smem:[#allocation38_spill]]  ;;  %s814_s15 = scalar_lea.vmem [#allocation2], %s3179_s21 }
  0x55   : > { %s822_s9 = sshll.u32 %s814_s15, 4  ;;  %p4382_p7 = pnand %p3400_p4, %p4353_p12  ;;  %s823_s9 = int_to_ptr.vmem [resolvable:$true] %s822_s9 }
  0x56   : > { %s832_s11 = sand.u32 1, %s4070_s28   ;;  %s3182_s12 = sshll.u32 %s4369_s8, 5 }
  0x57   : > { %s811_s14 = scalar_lea.sflag [#allocation3], %s4369_s8  ;;  %p3920_p9 = pneg %p4382_p7 }
  0x5a   : > { %s819_s6 = scalar_lea.hbm %s5069_s0, %s3289_s10  ;;  %s3923_s21 = scalar_lea.hbm %s5069_s0, 32 }
  0x5b   : > { %s820_s17 = sshll.u32 %s819_s6, 4  ;;  %s821_s17 = int_to_ptr.hbm [resolvable:$true] %s820_s17 }
  0x5c   : > { %s3916_s16 = sshra.s32 %s821_s17, 4  ;;  %s3917_s16 = int_to_ptr.hbm [resolvable:$true] %s3916_s16 }
  0x5d   : > { %s3918_s18 = scalar_lea.hbm %s3917_s16, 16  ;;  %p3924_p12 = scmp.lt.s32.totalorder %s3917_s16, %s5069_s0 }
  0x5e   : > { %p3919_p8 = scmp.ne.s32.totalorder %s3917_s16, %s3918_s18  ;;  %p3925_p2 = scmp.lt.s32.totalorder %s3923_s21, %s3918_s18 }
  0x60   : > { %p3921_p10 = pnand %p3920_p9, %p3919_p8  ;;  %p3926_p4 = por %p3925_p2, %p3924_p12 }
  0x62   : > { %p3922_p11 = pneg %p3921_p10 }
  0x64   : > { %p3927_p5 = pnand %p3926_p4, %p3922_p11 }
  0x66   : > { %3930 = shalt.err (!%p3927_p5)
}
  0x67   : > { %s5071_s8 = smov 8   ;;  %s5072_s29 = smov 128  }
  0x68   : > { %3381 = dma.hbm_to_vmem [thread:$0]  (!%p4382_p7), %s821_s17, 256, %s823_s9, %s811_s14, %s5072_s29, %s5072_s29, %s5071_s8  }
  0x69   : > { %s3291_s6 = sshll.u32 %s4070_s28, 5  ;;  %s836_s25 = scalar_lea.vmem [#allocation5], %s3182_s12 }
  0x6a   : > { %s845_s15 = sshll.u32 %s836_s25, 4  ;;  %s5073_s24 = sld [smem:[#allocation39_spill]]  ;;  %s846_s15 = int_to_ptr.vmem [resolvable:$true] %s845_s15 }
  0x6b   : > { %s833_s18 = scalar_lea.sflag [#allocation6], %s832_s11 }
  0x70   : > { %s842_s10 = scalar_lea.hbm %s5073_s24, %s3291_s6  ;;  %s3953_s12 = scalar_lea.hbm %s5073_s24, 64 }
  0x71   : > { %s843_s16 = sshll.u32 %s842_s10, 4  ;;  %s844_s16 = int_to_ptr.hbm [resolvable:$true] %s843_s16 }
  0x72   : > { %s3946_s21 = sshra.s32 %s844_s16, 4  ;;  %s3947_s21 = int_to_ptr.hbm [resolvable:$true] %s3946_s21 }
  0x73   : > { %s3948_s1 = scalar_lea.hbm %s3947_s21, 32  ;;  %p3954_p11 = scmp.lt.s32.totalorder %s3947_s21, %s5073_s24 }
  0x74   : > { %p3949_p5 = scmp.ne.s32.totalorder %s3947_s21, %s3948_s1  ;;  %p3955_p12 = scmp.lt.s32.totalorder %s3953_s12, %s3948_s1 }
  0x76   : > { %p3951_p8 = pnand %p3949_p5, %p3920_p9  ;;  %p3956_p2 = por %p3955_p12, %p3954_p11 }
  0x78   : > { %p3952_p10 = pneg %p3951_p8 }
  0x7a   : > { %p3957_p4 = pnand %p3956_p2, %p3952_p10 }
  0x7c   : > { %3960 = shalt.err (!%p3957_p4)
}
  0x7d   : > { %3384 = dma.hbm_to_vmem [thread:$0]  (!%p4382_p7), %s844_s16, 512, %s846_s15, %s833_s18, %s5072_s29, %s5072_s29, %s5071_s8  }
  0x7e   : > { %857 = sbr.rel (%p4248_p3) target bundleno = 3473 (0xd91), region = 116  ;;  %s4426_s11 = sand.u32 (!%p4248_p3), 1, %s4062_s26  }
  0x7f   : > { %s3187_s27 = sshll.u32 (!%p4248_p3), %s4426_s11, 4  ;;  %s860_s6 = scalar_lea.sflag (!%p4248_p3), [#allocation3], %s4426_s11 }
  0x80   : > { %s4432_s2 = scalar_lea.vmem (!%p4248_p3), [#allocation2], %s3187_s27 }
  0x83   : > { %4021 = dma.done.wait (%p4359_p13), %s860_s6, 256  }
  0x84   : > { %4023 = vsyncadd (%p4359_p13), %s860_s6, 4294967040  ;;  %s869_s30 = sand.u32 1, %s4243_s7   ;;  %s3188_s3 = sshll.u32 %s4426_s11, 5 }
  0x85   : > { %s870_s8 = scalar_lea.sflag [#allocation6], %s869_s30  ;;  %s4440_s29 = scalar_lea.vmem [#allocation5], %s3188_s3 }
  0x86   : > { %4025 = dma.done.wait (%p4359_p13), %s870_s8, 512  }
  0x87   : > { %4027 = vsyncadd (%p4359_p13), %s870_s8, 4294966784 }
  0x88   : > { %4029 = dma.done.wait (%p121_p1), [#allocation6], 512  }
  0x89   : > { %4031 = vsyncadd (%p121_p1), [#allocation6], 4294966784 }
  0x8a   : > { %4033 = dma.done.wait (%p121_p1), [#allocation9], 528  }
  0x8b   : > { %4035 = vsyncadd (%p121_p1), [#allocation9], 4294966768 }
  0x8c   : > { %4037 = dma.done.wait (%p121_p1), [#allocation12], 528  }
  0x8d   : > { %4039 = vsyncadd (%p121_p1), [#allocation12], 4294966768 }
  0x8e   : > { %4041 = dma.done.wait (%p121_p1), [#allocation15], 528  }
  0x8f   : > { %4043 = vsyncadd (%p121_p1), [#allocation15], 4294966768 }
  0x90   : > { %4045 = dma.done.wait (%p121_p1), [#allocation18], 1024  }
  0x91   : > { %4047 = vsyncadd (%p121_p1), [#allocation18], 4294966272 }
  0x92   : > { %4049 = dma.done.wait (%p121_p1), [#allocation21], 1024  }
  0x93   : > { %4051 = vsyncadd (%p121_p1), [#allocation21], 4294966272  ;;  %s3201_s4 = sshll.u32 %s4243_s7, 1  ;;  %s5074_s18 = sld [smem:[#allocation36_spill]]  ;;  %v1045_v0 = vld [vmem:[#allocation7 + $0x18] sm:$0xff]  ;;  %v1044_v1 = vld [vmem:[#allocation7 + $0x10] sm:$0xff] }
  0x94   : > { %p1011_p3 = scmp.lt.s32.totalorder %s3201_s4, 3  ;;  %1069 = vmatpush.msra.mxu1 %v1045_v0  ;;  %v4480_v3 = vld [vmem:[%s4432_s2] sm:$0xff]  ;;  %v1043_v4 = vld [vmem:[#allocation7 + $0x8] sm:$0xff]  ;;  %vm1050_vm0 = vcmask 261120   ;;  %s5075_s14 = sld [smem:[#allocation41_spill]]  ;;  %vm1153_vm1 = vcmask 64512  }
  0x95   : > { %v1042_v5 = vld [vmem:[#allocation7] sm:$0xff]  ;;  %v4488_v8 = vld [vmem:[%s4432_s2 + $0x8] sm:$0xff]  ;;  %s4085_s12 = smov 104   ;;  %s4086_s17 = smov 112   ;;  %v1082_v26 = vld [vmem:[#allocation8 + $0x10] sm:$0xff] }
  0x96   : > { %s5094_s4 = smov (!%p1011_p3, %s3201_s4), 3  ;;  %1070 = vmatpush.msra.mxu1 %v1044_v1  ;;  %s4087_s25 = smov 120   ;;  %v1083_v25 = vld [vmem:[#allocation8 + $0x18] sm:$0xff]  ;;  %v1081_v28 = vld [vmem:[#allocation8 + $0x8] sm:$0xff]  ;;  %v1080_v30 = vld [vmem:[#allocation8] sm:$0xff] }
  0x97   : > { %s3202_s15 = sshll.u32 %s5094_s4, 3  ;;  %s4088_s6 = smov 96   ;;  %v3498_v37 = vld [vmem:[#allocation10] ss:$0 sm:$0xff] }
  0x98   : > { %1071 = vmatpush.msra.mxu1 %v1043_v4  ;;  %s4089_s2 = smov 8   ;;  %s4090_s30 = smov 16  }
  0x99   : > { %s1014_s21 = scalar_lea.vmem %s5074_s18, %s3202_s15  ;;  %s4091_s3 = smov 24  }
  0x9a   : > { %v4477_v2 = vld [vmem:[%s1014_s21] sm:$0xff]  ;;  %1072 = vmatpush.msra.mxu1 %v1042_v5  ;;  %v4485_v7 = vld [vmem:[%s1014_s21 + $0x8] sm:$0xff]  ;;  %s3292_s8 = sshll.u32 %s5094_s4, 4  ;;  %s5080_s16 = sld [smem:[#allocation37_spill]] }
  0x9b   : > { %v1040_v6 = vadd.f32 %v4480_v3, %v4477_v2  ;;  %v1041_v9 = vadd.f32 %v4488_v8, %v4485_v7  ;;  %v3497_v10 = vld [vmem:[%s5075_s14] ss:$0 sm:$0xff]  ;;  %s5081_s15 = sld [smem:[#allocation50_spill]] }
  0x9c   : > { %1106 = vmatpush.msrb.mxu1 %v1083_v25  ;;  %s5083_s10 = sld [smem:[#allocation55_spill]] }
  0x9d   : > { %3206 = vmatmul.msk.f32.vlgmr.msra.gmra.mxu1 %vm1050_vm0, %v1040_v6  ;;  %s5085_s21 = sld [smem:[#allocation56_spill]] }
  0x9e   : > { %1107 = vmatpush.msrb.mxu1 %v1082_v26 }
  0xa0   : > { %1108 = vmatpush.msrb.mxu1 %v1081_v28  ;;  %s4665_s18 = scalar_lea.vmem %s5080_s16, %s3292_s8  ;;  %s5084_s16 = sld [smem:[#allocation54_spill]] }
  0xa1   : > { %s3293_s8 = sshll.u32 %s4243_s7, 4 }
  0xa2   : > { %1109 = vmatpush.msrb.mxu1 %v1080_v30 }
  0xa5   : > { %3207 = vmatmul.msk.f32.gmra.mxu1 %vm1050_vm0, %v1041_v9 }
  0xad   : > { %3208 = vmatmul.msk.f32.vlgmr.msrb.gmra.mxu1 %vm1050_vm0, %v4477_v2 }
  0xb5   : > { %3209 = vmatmul.msk.f32.gmra.mxu1 %vm1050_vm0, %v4485_v7 }
 0x11a   : > { %v1074_v11 = vpop.f32.mrf.mxu1 }
 0x11b   : > { %v1075_v12 = vadd.f32 %v3497_v10, %v1074_v11 }
 0x11d   : > { %1127 = vrot.lane.b32.xlu2 %v1075_v12, %s4085_s12  ;;  %1123 = vrot.lane.b32.xlu1 %v1075_v12, %s4086_s17 }
 0x11e   : > { %1119 = vrot.lane.b32.xlu0 %v1075_v12, %s4087_s25 }
 0x122   : > { %v1077_v13 = vpop.f32.mrf.mxu1 }
 0x123   : > { %v1078_v14 = vadd.f32 %v3497_v10, %v1077_v13 }
 0x125   : > { %1129 = vrot.lane.b32.xlu2 %v1078_v14, %s4085_s12  ;;  %1125 = vrot.lane.b32.xlu1 %v1078_v14, %s4086_s17 }
 0x126   : > { %1121 = vrot.lane.b32.xlu0 %v1078_v14, %s4087_s25 }
 0x12a   : > { %v1111_v38 = vpop.f32.mrf.mxu1 }
 0x12b   : > { %v4524_v39 = vadd.f32 %v3498_v37, %v1111_v38 }
 0x12d   : > { %1178 = vrot.lane.b32.xlu1 %v1078_v14, %s4088_s6 }
 0x12e   : > { %1151 = vrot.lane.b32.xlu0 %v1075_v12, %s4088_s6 }
 0x132   : > { %v1114_v55 = vpop.f32.mrf.mxu1 }
 0x133   : > { %v1115_v56 = vadd.f32 %v3498_v37, %v1114_v55 }
 0x177   : > { %v1128_v15 = vpop.permute.xlu2 %1127 }
 0x17f   : > { %v1130_v18 = vpop.permute.xlu2 %1129 }
 0x18f   : > { %v1124_v16 = vpop.permute.xlu1 %1123 }
 0x190   : > { %v1120_v17 = vpop.permute.xlu0 %1119  ;;  %1256 = vrot.lane.b32.xlu1 %v1124_v16, %s4088_s6 }
 0x191   : > { %1204 = vrot.lane.b32.xlu2 %v1120_v17, %s4088_s6 }
 0x197   : > { %v1126_v19 = vpop.permute.xlu1 %1125 }
 0x198   : > { %v1122_v20 = vpop.permute.xlu0 %1121  ;;  %1334 = vrot.lane.b32.xlu1 %v1130_v18, %s4088_s6 }
 0x199   : > { %1282 = vrot.lane.b32.xlu2 %v1126_v19, %s4088_s6  ;;  %1230 = vrot.lane.b32.xlu0 %v1122_v20, %s4088_s6 }
 0x19f   : > { %v1179_v21 = vpop.permute.xlu1 %1178 }
 0x1a0   : > { %v1152_v22 = vpop.permute.xlu0 %1151  ;;  %3212 = vmatpush.xpose.msk.msra.mxu3 %vm1153_vm1, %v1179_v21 }
 0x1a1   : > { %1308 = vrot.lane.b32.xlu0 %v1128_v15, %s4088_s6  ;;  %3210 = vmatpush.xpose.msk.msra.mxu2 %vm1153_vm1, %v1152_v22  ;;  %s1009_s6 = scalar_lea.vmem [#allocation23], %s3187_s27 }
 0x1a2   : > { %s2938_s27 = sshll.u32 %s1009_s6, 4  ;;  %s2939_s27 = int_to_ptr.vmem [resolvable:$true] %s2938_s27 }
 0x1a3   : > { %3213 = vmatmul.msk.f32.vlgmr.msra.gmra.mxu3 %vm1153_vm1, %v1078_v14 }
 0x1a4   : > { %3211 = vmatmul.msk.f32.vlgmr.msra.gmra.mxu2 %vm1153_vm1, %v1075_v12 }
 0x1eb   : > { %v1205_v23 = vpop.permute.xlu2 %1204 }
 0x1ec   : > { %3214 = vmatpush.xpose.msk.msrb.mxu2 %vm1153_vm1, %v1205_v23 }
 0x1ef   : > { %3215 = vmatmul.msk.f32.vlgmr.msrb.gmra.mxu2 %vm1153_vm1, %v1120_v17 }
 0x1f3   : > { %v1283_v29 = vpop.permute.xlu2 %1282 }
 0x202   : > { %v1257_v24 = vpop.permute.xlu1 %1256 }
 0x203   : > { %3218 = vmatpush.xpose.msk.msra.mxu2 %vm1153_vm1, %v1257_v24 }
 0x206   : > { %3219 = vmatmul.msk.f32.vlgmr.msra.gmra.mxu2 %vm1153_vm1, %v1124_v16 }
 0x207   : > { %1570 = vmatpush.msrb.mxu2 %v4524_v39 }
 0x20a   : > { %v1335_v32 = vpop.permute.xlu1 %1334 }
 0x20b   : > { %v1231_v27 = vpop.permute.xlu0 %1230 }
 0x20c   : > { %3216 = vmatpush.xpose.msk.msrb.mxu3 %vm1153_vm1, %v1231_v27 }
 0x20f   : > { %3217 = vmatmul.msk.f32.vlgmr.msrb.gmra.mxu3 %vm1153_vm1, %v1122_v20 }
 0x210   : > { %3220 = vmatpush.xpose.msk.msra.mxu3 %vm1153_vm1, %v1283_v29 }
 0x213   : > { %v1309_v31 = vpop.permute.xlu0 %1308 }
 0x214   : > { %3222 = vmatpush.xpose.msk.msra.mxu0 %vm1153_vm1, %v1309_v31  ;;  %1593 = vmatpush.msrb.mxu3 %v1115_v56 }
 0x217   : > { %3221 = vmatmul.msk.f32.vlgmr.msra.gmra.mxu3 %vm1153_vm1, %v1126_v19  ;;  %3223 = vmatmul.msk.f32.vlgmr.msra.gmra.mxu0 %vm1153_vm1, %v1128_v15 }
 0x218   : > { %3224 = vmatpush.xpose.msk.msrb.mxu0 %vm1153_vm1, %v1335_v32 }
 0x21f   : > { %3225 = vmatmul.msk.f32.vlgmr.msrb.gmra.mxu0 %vm1153_vm1, %v1130_v18 }
 0x226   : > { %v1201_v33 = vpop.f32.mrf.mxu3 }
 0x227   : > { %v1175_v34 = vpop.f32.mrf.mxu2  ;;  %v1363_v35 = vsel %vm1153_vm1, %v1201_v33, -inf }
 0x228   : > { %1364 = vmax.xlane.f32.xlu1 %v1363_v35  ;;  %v1360_v36 = vsel %vm1153_vm1, %v1175_v34, -inf }
 0x229   : > { %1361 = vmax.xlane.f32.xlu2 %v1360_v36 }
 0x272   : > { %v1227_v43 = vpop.f32.mrf.mxu2 }
 0x273   : > { %v1366_v47 = vsel %vm1153_vm1, %v1227_v43, -inf }
 0x289   : > { %v1279_v49 = vpop.f32.mrf.mxu2 }
 0x28a   : > { %v1372_v50 = vsel %vm1153_vm1, %v1279_v49, -inf }
 0x292   : > { %v4526_v40 = vpop.f32.mrf.mxu3 }
 0x293   : > { %v1369_v51 = vsel %vm1153_vm1, %v4526_v40, -inf }
 0x294   : > { %v1331_v41 = vpop.f32.mrf.mxu0 }
 0x295   : > { %v1378_v42 = vsel %vm1153_vm1, %v1331_v41, -inf }
 0x296   : > { %1379 = vmax.xlane.f32.xlu0 %v1378_v42 }
 0x29a   : > { %v1305_v44 = vpop.f32.mrf.mxu3 }
 0x29b   : > { %v1375_v45 = vsel %vm1153_vm1, %v1305_v44, -inf  ;;  %v1365_v58 = vpop.xlane.xlu1 %1364 }
 0x29c   : > { %1376 = vmax.xlane.f32.xlu1 %v1375_v45  ;;  %v1357_v46 = vpop.f32.mrf.mxu0  ;;  %v1362_v52 = vpop.xlane.xlu2 %1361  ;;  %v1385_v60 = vsub.f32 %v1201_v33, %v1365_v58 }
 0x29d   : > { %v1381_v48 = vsel %vm1153_vm1, %v1357_v46, -inf  ;;  %v1384_v53 = vsub.f32 %v1175_v34, %v1362_v52 }
 0x29e   : > { %1367 = vmax.xlane.f32.xlu0 %v1366_v47  ;;  %1382 = vmax.xlane.f32.xlu2 %v1381_v48  ;;  %v1394_v61 = vmul.f32 1.442695, %v1385_v60 }
 0x29f   : > { %v1392_v54 = vmul.f32 1.442695, %v1384_v53 }
 0x2a1   : > { %3506 = vpow2.f32 %v1392_v54 }
 0x2a2   : > { %3508 = vpow2.f32 %v1394_v61 }
 0x2a6   : > { %1373 = vmax.xlane.f32.xlu2 %v1372_v50 }
 0x2a7   : > { %v4541_v57 = vpop.eup %3506 }
 0x2a8   : > { %v1408_v59 = vsel %vm1153_vm1, %v4541_v57, 0.0  ;;  %v4545_v62 = vpop.eup %3508 }
 0x2a9   : > { %v1411_v63 = vsel %vm1153_vm1, %v4545_v62, 0.0 }
 0x2ae   : > { %1370 = vmax.xlane.f32.xlu2 %v1369_v51 }
 0x2b2   : > { %1139 = vrot.lane.b32.xlu0 %v4524_v39, %s4086_s17 }
 0x2b5   : > { %1135 = vrot.lane.b32.xlu1 %v1115_v56, %s4087_s25 }
 0x2c6   : > { %1133 = vrot.lane.b32.xlu2 %v4524_v39, %s4087_s25 }
 0x2dc   : > { %1409 = vadd.xlane.f32.xlu0 %v1408_v59 }
 0x2ef   : > { %1412 = vadd.xlane.f32.xlu2 %v1411_v63 }
 0x309   : > { %v1380_v0 = vpop.xlane.xlu0 %1379 }
 0x30a   : > { %v1390_v1 = vsub.f32 %v1331_v41, %v1380_v0 }
 0x30c   : > { %v1404_v4 = vmul.f32 1.442695, %v1390_v1 }
 0x30e   : > { %3510 = vpow2.f32 %v1404_v4 }
 0x30f   : > { %v1377_v15 = vpop.xlane.xlu1 %1376 }
 0x310   : > { %v1389_v19 = vsub.f32 %v1305_v44, %v1377_v15 }
 0x311   : > { %v1368_v5 = vpop.xlane.xlu0 %1367  ;;  %v1383_v6 = vpop.xlane.xlu2 %1382 }
 0x312   : > { %v1386_v9 = vsub.f32 %v1227_v43, %v1368_v5  ;;  %v1391_v12 = vsub.f32 %v1357_v46, %v1383_v6  ;;  %v1402_v22 = vmul.f32 1.442695, %v1389_v19 }
 0x314   : > { %v4549_v10 = vpop.eup %3510  ;;  %v1396_v11 = vmul.f32 1.442695, %v1386_v9  ;;  %v1406_v14 = vmul.f32 1.442695, %v1391_v12 }
 0x315   : > { %v1426_v13 = vsel %vm1153_vm1, %v4549_v10, 0.0 }
 0x316   : > { %3512 = vpow2.f32 %v1396_v11  ;;  %1427 = vadd.xlane.f32.xlu2 %v1426_v13 }
 0x317   : > { %3514 = vpow2.f32 %v1406_v14 }
 0x319   : > { %v1374_v16 = vpop.xlane.xlu2 %1373 }
 0x31a   : > { %v1388_v17 = vsub.f32 %v1279_v49, %v1374_v16 }
 0x31c   : > { %v4553_v18 = vpop.eup %3512  ;;  %v1400_v20 = vmul.f32 1.442695, %v1388_v17 }
 0x31d   : > { %v1414_v21 = vsel %vm1153_vm1, %v4553_v18, 0.0  ;;  %v4557_v24 = vpop.eup %3514 }
 0x31e   : > { %3516 = vpow2.f32 %v1400_v20  ;;  %1415 = vadd.xlane.f32.xlu1 %v1414_v21  ;;  %v1429_v29 = vsel %vm1153_vm1, %v4557_v24, 0.0 }
 0x31f   : > { %3518 = vpow2.f32 %v1402_v22 }
 0x321   : > { %v1371_v23 = vpop.xlane.xlu2 %1370 }
 0x322   : > { %v1387_v25 = vsub.f32 %v4526_v40, %v1371_v23 }
 0x324   : > { %v4560_v26 = vpop.eup %3516  ;;  %v1398_v27 = vmul.f32 1.442695, %v1387_v25  ;;  %v1140_v28 = vpop.permute.xlu0 %1139 }
 0x325   : > { %v1420_v30 = vsel %vm1153_vm1, %v4560_v26, 0.0  ;;  %1662 = vmatpush.msra.mxu2 %v1140_v28  ;;  %v4566_v32 = vpop.eup %3518 }
 0x326   : > { %3520 = vpow2.f32 %v1398_v27  ;;  %1430 = vadd.xlane.f32.xlu1 %v1429_v29  ;;  %1421 = vadd.xlane.f32.xlu0 %v1420_v30  ;;  %v1423_v34 = vsel %vm1153_vm1, %v4566_v32, 0.0 }
 0x327   : > { %v1136_v36 = vpop.permute.xlu1 %1135 }
 0x328   : > { %1639 = vmatpush.msra.mxu1 %v1136_v36 }
 0x329   : > { %v1134_v31 = vpop.permute.xlu2 %1133 }
 0x32a   : > { %1616 = vmatpush.msra.mxu0 %v1134_v31 }
 0x32c   : > { %v4568_v33 = vpop.eup %3520 }
 0x32d   : > { %v1417_v35 = vsel %vm1153_vm1, %v4568_v33, 0.0 }
 0x32e   : > { %1141 = vrot.lane.b32.xlu2 %v1115_v56, %s4086_s17  ;;  %1424 = vadd.xlane.f32.xlu0 %v1423_v34 }
 0x32f   : > { %1418 = vadd.xlane.f32.xlu1 %v1417_v35 }
 0x342   : > { %1145 = vrot.lane.b32.xlu0 %v4524_v39, %s4085_s12 }
 0x348   : > { %1147 = vrot.lane.b32.xlu1 %v1115_v56, %s4085_s12 }
 0x34f   : > { %v1410_v37 = vpop.xlane.xlu0 %1409 }
 0x350   : > { %3522 = vrcp.f32 %v1410_v37  ;;  %v1443_v42 = vand.u32 2147483648, %v1410_v37  ;;  %v1441_v44 = vand.u32 2147483647, %v1410_v37  ;;  %vm1437_vm3 = vweird.f32 %v1410_v37 }
 0x352   : > { %v1444_v46 = vor.u32 1.1754944e-38, %v1443_v42  ;;  %vm1442_vm5 = vcmp.eq.f32.partialorder %v1441_v44, 8.507059e+37 }
 0x356   : > { %v3523_v38 = vpop.eup %3522 }
 0x357   : > { %v1433_v40 = vmul.f32 %v3523_v38, %v1410_v37  ;;  %vm1438_vm2 = vweird.f32 %v3523_v38 }
 0x358   : > { %vm1439_vm4 = vmor %vm1437_vm3, %vm1438_vm2 }
 0x359   : > { %v1434_v41 = vsub.f32 1.0, %v1433_v40 }
 0x35b   : > { %v1435_v43 = vmul.f32 %v3523_v38, %v1434_v41 }
 0x35d   : > { %v1436_v45 = vadd.f32 %v3523_v38, %v1435_v43 }
 0x35f   : > { %v1440_v47 = vsel %vm1439_vm4, %v3523_v38, %v1436_v45 }
 0x360   : > { %v1445_v39 = vsel %vm1442_vm5, %v1444_v46, %v1440_v47 }
 0x361   : > { %v1544_v48 = vmul.f32 %v4541_v57, %v1445_v39 }
 0x362   : > { %v1413_v49 = vpop.xlane.xlu2 %1412 }
 0x363   : > { %3524 = vrcp.f32 %v1413_v49  ;;  %3226 = vmatmul.msk.f32.vlgmr.msrb.gmra.mxu2 %vm1153_vm1, %v1544_v48  ;;  %v1457_v53 = vand.u32 2147483648, %v1413_v49  ;;  %v1455_v55 = vand.u32 2147483647, %v1413_v49  ;;  %vm1451_vm7 = vweird.f32 %v1413_v49 }
 0x365   : > { %v1458_v58 = vor.u32 1.1754944e-38, %v1457_v53  ;;  %vm1456_vm9 = vcmp.eq.f32.partialorder %v1455_v55, 8.507059e+37 }
 0x369   : > { %v3525_v50 = vpop.eup %3524 }
 0x36a   : > { %v1447_v51 = vmul.f32 %v3525_v50, %v1413_v49  ;;  %vm1452_vm6 = vweird.f32 %v3525_v50 }
 0x36b   : > { %vm1453_vm8 = vmor %vm1451_vm7, %vm1452_vm6 }
 0x36c   : > { %v1448_v52 = vsub.f32 1.0, %v1447_v51 }
 0x36e   : > { %v1449_v54 = vmul.f32 %v3525_v50, %v1448_v52 }
 0x370   : > { %v1450_v56 = vadd.f32 %v3525_v50, %v1449_v54 }
 0x372   : > { %v1454_v59 = vsel %vm1453_vm8, %v3525_v50, %v1450_v56 }
 0x373   : > { %v1459_v60 = vsel %vm1456_vm9, %v1458_v58, %v1454_v59 }
 0x374   : > { %v1545_v57 = vmul.f32 %v4545_v62, %v1459_v60 }
 0x376   : > { %3227 = vmatmul.msk.f32.vlgmr.msrb.gmra.mxu3 %vm1153_vm1, %v1545_v57 }
 0x389   : > { %v4582_v61 = vpop.xlane.xlu2 %1427 }
 0x38a   : > { %v1525_v36 = vand.u32 2147483647, %v4582_v61  ;;  %vm1521_vm4 = vweird.f32 %v4582_v61 }
 0x38c   : > { %vm4615_vm7 = vcmp.eq.f32.partialorder %v1525_v36, 8.507059e+37 }
 0x391   : > { %v1416_v63 = vpop.xlane.xlu1 %1415  ;;  %v1142_v0 = vpop.permute.xlu2 %1141 }
 0x392   : > { %3526 = vrcp.f32 %v1416_v63  ;;  %1685 = vmatpush.msra.mxu3 %v1142_v0  ;;  %v1471_v13 = vand.u32 2147483648, %v1416_v63  ;;  %v1469_v14 = vand.u32 2147483647, %v1416_v63  ;;  %vm1465_vm11 = vweird.f32 %v1416_v63 }
 0x393   : > { %3528 = vrcp.f32 %v4582_v61 }
 0x394   : > { %v1472_v20 = vor.u32 1.1754944e-38, %v1471_v13  ;;  %vm1470_vm13 = vcmp.eq.f32.partialorder %v1469_v14, 8.507059e+37 }
 0x398   : > { %v3527_v1 = vpop.eup %3526 }
 0x399   : > { %v4585_v4 = vpop.eup %3528  ;;  %v1461_v5 = vmul.f32 %v3527_v1, %v1416_v63  ;;  %v4587_v6 = vpop.xlane.xlu1 %1430  ;;  %vm1466_vm10 = vweird.f32 %v3527_v1 }
 0x39a   : > { %v1422_v9 = vpop.xlane.xlu0 %1421  ;;  %v1517_v62 = vmul.f32 %v4585_v4, %v4582_v61  ;;  %vm1467_vm12 = vmor %vm1465_vm11, %vm1466_vm10  ;;  %vm1522_vm15 = vweird.f32 %v4585_v4  ;;  %v1541_v13 = vand.u32 2147483648, %v4587_v6 }
 0x39b   : > { %v1462_v11 = vsub.f32 1.0, %v1461_v5  ;;  %3530 = vrcp.f32 %v1422_v9  ;;  %v1499_v30 = vand.u32 2147483648, %v1422_v9  ;;  %v1497_v34 = vand.u32 2147483647, %v1422_v9  ;;  %vm4607_vm6 = vmor %vm1521_vm4, %vm1522_vm15 }
 0x39c   : > { %3532 = vrcp.f32 %v4587_v6  ;;  %v1518_v16 = vsub.f32 1.0, %v1517_v62  ;;  %vm1493_vm2 = vweird.f32 %v1422_v9 }
 0x39d   : > { %v1463_v12 = vmul.f32 %v3527_v1, %v1462_v11  ;;  %v1500_v42 = vor.u32 1.1754944e-38, %v1499_v30  ;;  %vm1498_vm5 = vcmp.eq.f32.partialorder %v1497_v34, 8.507059e+37  ;;  %v1771_v30 = vld [vmem:[#allocation11 + $0x18] sm:$0xff]  ;;  %v1769_v34 = vld [vmem:[#allocation11 + $0x8] sm:$0xff] }
 0x39e   : > { %v1519_v28 = vmul.f32 %v4585_v4, %v1518_v16  ;;  %1794 = vmatpush.msrb.mxu2 %v1771_v30  ;;  %v1866_v30 = vld [vmem:[#allocation14] sm:$0xff] }
 0x39f   : > { %v1464_v15 = vadd.f32 %v3527_v1, %v1463_v12 }
 0x3a0   : > { %v1520_v40 = vadd.f32 %v4585_v4, %v1519_v28 }
 0x3a1   : > { %v3531_v17 = vpop.eup %3530  ;;  %v1468_v19 = vsel %vm1467_vm12, %v3527_v1, %v1464_v15 }
 0x3a2   : > { %v1425_v21 = vpop.xlane.xlu0 %1424  ;;  %v1489_v22 = vmul.f32 %v3531_v17, %v1422_v9  ;;  %v4592_v23 = vpop.xlane.xlu1 %1418  ;;  %v1473_v25 = vsel %vm1470_vm13, %v1472_v20, %v1468_v19  ;;  %vm1494_vm14 = vweird.f32 %v3531_v17  ;;  %v1524_v50 = vsel %vm4607_vm6, %v4585_v4, %v1520_v40 }
 0x3a3   : > { %3534 = vrcp.f32 %v1425_v21  ;;  %v4594_v27 = vpop.eup %3532  ;;  %v1546_v35 = vmul.f32 %v4553_v18, %v1473_v25  ;;  %vm1495_vm3 = vmor %vm1493_vm2, %vm1494_vm14  ;;  %v1527_v18 = vand.u32 2147483648, %v4582_v61  ;;  %v1513_v52 = vand.u32 2147483648, %v1425_v21 }
 0x3a4   : > { %v1490_v29 = vsub.f32 1.0, %v1489_v22  ;;  %3536 = vrcp.f32 %v4592_v23  ;;  %v1531_v37 = vmul.f32 %v4594_v27, %v4587_v6  ;;  %v1511_v55 = vand.u32 2147483647, %v1425_v21 }
 0x3a5   : > { %3228 = vmatmul.msk.f32.vlgmr.msra.gmra.mxu0 %vm1153_vm1, %v1546_v35  ;;  %v1528_v58 = vor.u32 1.1754944e-38, %v1527_v18  ;;  %vm1507_vm9 = vweird.f32 %v1425_v21  ;;  %v1483_v59 = vand.u32 2147483647, %v4592_v23  ;;  %v1485_v60 = vand.u32 2147483648, %v4592_v23  ;;  %v1768_v35 = vld [vmem:[#allocation11] sm:$0xff] }
 0x3a6   : > { %v1491_v31 = vmul.f32 %v3531_v17, %v1490_v29  ;;  %v1532_v47 = vsub.f32 1.0, %v1531_v37  ;;  %v1514_v0 = vor.u32 1.1754944e-38, %v1513_v52  ;;  %vm1512_vm12 = vcmp.eq.f32.partialorder %v1511_v55, 8.507059e+37 }
 0x3a7   : > { %vm1479_vm13 = vweird.f32 %v4592_v23  ;;  %vm1536_vm14 = vweird.f32 %v4594_v27  ;;  %v1486_v9 = vor.u32 1.1754944e-38, %v1485_v60  ;;  %vm1484_vm2 = vcmp.eq.f32.partialorder %v1483_v59, 8.507059e+37  ;;  %v1909_v60 = vld [vmem:[#allocation17 + $0x10] sm:$0xff] }
 0x3a8   : > { %v1492_v41 = vadd.f32 %v3531_v17, %v1491_v31  ;;  %v1533_v57 = vmul.f32 %v4594_v27, %v1532_v47  ;;  %v1542_v20 = vor.u32 1.1754944e-38, %v1541_v13  ;;  %v1770_v31 = vld [vmem:[#allocation11 + $0x10] sm:$0xff]  ;;  %vm1762_vm6 = vcmask 130048  }
 0x3a9   : > { %v3535_v38 = vpop.eup %3534  ;;  %1795 = vmatpush.msrb.mxu2 %v1770_v31 }
 0x3aa   : > { %v1503_v43 = vmul.f32 %v3535_v38, %v1425_v21  ;;  %v3537_v44 = vpop.eup %3536  ;;  %v1496_v45 = vsel %vm1495_vm3, %v3531_v17, %v1492_v41  ;;  %vm1508_vm8 = vweird.f32 %v3535_v38  ;;  %v1534_v11 = vadd.f32 %v4594_v27, %v1533_v57 }
 0x3ab   : > { %v1501_v39 = vsel %vm1498_vm5, %v1500_v42, %v1496_v45  ;;  %v1475_v49 = vmul.f32 %v3537_v44, %v4592_v23  ;;  %vm1480_vm10 = vweird.f32 %v3537_v44  ;;  %vm1509_vm11 = vmor %vm1507_vm9, %vm1508_vm8  ;;  %vm1535_vm3 = vweird.f32 %v4587_v6  ;;  %1796 = vmatpush.msrb.mxu2 %v1769_v34 }
 0x3ac   : > { %v1504_v48 = vsub.f32 1.0, %v1503_v43  ;;  %v1548_v53 = vmul.f32 %v4560_v26, %v1501_v39  ;;  %v1529_v26 = vsel %vm4615_vm7, %v1528_v58, %v1524_v50  ;;  %vm1481_vm15 = vmor %vm1479_vm13, %vm1480_vm10  ;;  %v1539_v17 = vand.u32 2147483647, %v4587_v6  ;;  %v3499_v39 = vld [vmem:[#allocation13] ss:$0 sm:$0xff] }
 0x3ad   : > { %v1476_v56 = vsub.f32 1.0, %v1475_v49  ;;  %v1550_v16 = vmul.f32 %v4549_v10, %v1529_v26  ;;  %vm1537_vm4 = vmor %vm1535_vm3, %vm1536_vm14  ;;  %1797 = vmatpush.msrb.mxu2 %v1768_v35  ;;  %vm1765_vm7 = vcmask 195584   ;;  %v1907_v26 = vld [vmem:[#allocation17] sm:$0xff]  ;;  %v3500_v35 = vld [vmem:[%s5004_s13] ss:$0 sm:$0xff] }
 0x3ae   : > { %v1505_v54 = vmul.f32 %v3535_v38, %v1504_v48  ;;  %3230 = vmatmul.msk.f32.vlgmr.msra.gmra.mxu2 %vm1153_vm1, %v1548_v53  ;;  %vm1540_vm5 = vcmp.eq.f32.partialorder %v1539_v17, 8.507059e+37 }
 0x3af   : > { %v1477_v63 = vmul.f32 %v3537_v44, %v1476_v56  ;;  %v4092_v56 = vmov 32.0  }
 0x3b0   : > { %v1506_v61 = vadd.f32 %v3535_v38, %v1505_v54  ;;  %3538 = vrcp.f32 %v4092_v56 }
 0x3b1   : > { %v1478_v4 = vadd.f32 %v3537_v44, %v1477_v63  ;;  %v1908_v63 = vld [vmem:[#allocation17 + $0x8] sm:$0xff] }
 0x3b2   : > { %v1510_v1 = vsel %vm1509_vm11, %v3535_v38, %v1506_v61  ;;  %v1034_v61 = vld [vmem:[%s4440_s29] sm:$0xff] }
 0x3b3   : > { %v1515_v5 = vsel %vm1512_vm12, %v1514_v0, %v1510_v1  ;;  %v1482_v62 = vsel %vm1481_vm15, %v3537_v44, %v1478_v4 }
 0x3b4   : > { %v1549_v12 = vmul.f32 %v4566_v32, %v1515_v5  ;;  %v1487_v14 = vsel %vm1484_vm2, %v1486_v9, %v1482_v62  ;;  %v1146_v15 = vpop.permute.xlu0 %1145  ;;  %v1538_v32 = vsel %vm1537_vm4, %v4594_v27, %v1534_v11  ;;  %v4674_v5 = vld [vmem:[%s4665_s18 + $0x8] sm:$0xff] }
 0x3b5   : > { %v1547_v19 = vmul.f32 %v4568_v33, %v1487_v14  ;;  %1708 = vmatpush.msrb.mxu0 %v1146_v15  ;;  %v1543_v10 = vsel %vm1540_vm5, %v1542_v20, %v1538_v32  ;;  %v1035_v9 = vld [vmem:[%s4440_s29 + $0x8] sm:$0xff] }
 0x3b6   : > { %3231 = vmatmul.msk.f32.vlgmr.msra.gmra.mxu3 %vm1153_vm1, %v1549_v12  ;;  %3232 = vmatmul.msk.f32.vlgmr.msrb.gmra.mxu0 %vm1153_vm1, %v1550_v16  ;;  %v1551_v6 = vmul.f32 %v4557_v24, %v1543_v10  ;;  %v3539_v58 = vpop.eup %3538  ;;  %v1904_v11 = vadd.f32 %v1035_v9, %v4674_v5 }
 0x3b7   : > { %3229 = vmatmul.msk.f32.vlgmr.msra.gmra.mxu1 %vm1153_vm1, %v1547_v19  ;;  %v1814_v59 = vmul.f32 32.0, %v3539_v58  ;;  %vm1818_vm8 = vweird.f32 %v3539_v58 }
 0x3b9   : > { %v1815_v57 = vsub.f32 1.0, %v1814_v59 }
 0x3ba   : > { %v1148_v21 = vpop.permute.xlu1 %1147 }
 0x3bb   : > { %1731 = vmatpush.msrb.mxu1 %v1148_v21  ;;  %v1816_v1 = vmul.f32 %v3539_v58, %v1815_v57  ;;  %v4690_v21 = vld [vmem:[%s4665_s18 + $0x10] sm:$0xff] }
 0x3bd   : > { %v1817_v4 = vadd.f32 %v3539_v58, %v1816_v1 }
 0x3bf   : > { %3233 = vmatmul.msk.f32.vlgmr.msrb.gmra.mxu1 %vm1153_vm1, %v1551_v6  ;;  %v4678_v62 = vsel %vm1818_vm8, %v3539_v58, %v1817_v4  ;;  %v1036_v6 = vld [vmem:[%s4440_s29 + $0x10] sm:$0xff] }
 0x3e6   : > { %v1572_v22 = vpop.f32.mrf.mxu2 }
 0x3f9   : > { %v1595_v23 = vpop.f32.mrf.mxu3 }
 0x422   : > { %v1618_v33 = vpop.f32.mrf.mxu0 }
 0x423   : > { %1738 = vrot.lane.b32.xlu0 %v1618_v33, %s4089_s2  ;;  %v1905_v33 = vadd.f32 %v1036_v6, %v4690_v21 }
 0x431   : > { %v1664_v25 = vpop.f32.mrf.mxu2 }
 0x432   : > { %1746 = vrot.lane.b32.xlu2 %v1664_v25, %s4090_s30 }
 0x433   : > { %v1710_v27 = vpop.f32.mrf.mxu0 }
 0x434   : > { %v1641_v28 = vpop.f32.mrf.mxu1  ;;  %1754 = vrot.lane.b32.xlu1 %v1710_v27, %s4091_s3  ;;  %v1869_v27 = vld [vmem:[#allocation14 + $0x18] sm:$0xff] }
 0x435   : > { %1740 = vrot.lane.b32.xlu0 %v1641_v28, %s4089_s2  ;;  %1892 = vmatpush.msrb.mxu3 %v1869_v27  ;;  %v1868_v28 = vld [vmem:[#allocation14 + $0x10] sm:$0xff] }
 0x436   : > { %v1957_v27 = vld [vmem:[#allocation19 + $0x8] sm:$0xff] }
 0x437   : > { %1893 = vmatpush.msrb.mxu3 %v1868_v28  ;;  %v1956_v28 = vld [vmem:[#allocation19] sm:$0xff] }
 0x439   : > { %v1687_v24 = vpop.f32.mrf.mxu3 }
 0x43a   : > { %1748 = vrot.lane.b32.xlu2 %v1687_v24, %s4090_s30  ;;  %v1867_v24 = vld [vmem:[#allocation14 + $0x8] sm:$0xff] }
 0x43b   : > { %1894 = vmatpush.msrb.mxu3 %v1867_v24 }
 0x43c   : > { %v1733_v29 = vpop.f32.mrf.mxu1 }
 0x43d   : > { %1756 = vrot.lane.b32.xlu1 %v1733_v29, %s4091_s3  ;;  %1895 = vmatpush.msrb.mxu3 %v1866_v30 }
 0x48c   : > { %v1747_v38 = vpop.permute.xlu2 %1746 }
 0x494   : > { %v1749_v18 = vpop.permute.xlu2 %1748 }
 0x495   : > { %v1739_v36 = vpop.permute.xlu0 %1738 }
 0x496   : > { %v1760_v37 = vsel %vm1153_vm1, %v1572_v22, %v1739_v36  ;;  %v4696_v22 = vld [vmem:[%s4665_s18 + $0x18] sm:$0xff] }
 0x497   : > { %v1763_v41 = vsel %vm1762_vm6, %v1760_v37, %v1747_v38 }
 0x4a6   : > { %v1755_v40 = vpop.permute.xlu1 %1754 }
 0x4a7   : > { %v1766_v42 = vsel %vm1765_vm7, %v1763_v41, %v1755_v40  ;;  %v1741_v43 = vpop.permute.xlu0 %1740 }
 0x4a8   : > { %3234 = vmatmul.msk.f32.vlgmr.msrb.gmra.mxu2 %vm1050_vm0, %v1766_v42  ;;  %v1761_v44 = vsel %vm1153_vm1, %v1595_v23, %v1741_v43  ;;  %v1037_v23 = vld [vmem:[%s4440_s29 + $0x18] sm:$0xff] }
 0x4a9   : > { %v1764_v46 = vsel %vm1762_vm6, %v1761_v44, %v1749_v18  ;;  %v1906_v25 = vadd.f32 %v1037_v23, %v4696_v22  ;;  %v1959_v23 = vld [vmem:[#allocation19 + $0x18] sm:$0xff] }
 0x4aa   : > { %1988 = vmatpush.msra.mxu1 %v1959_v23 }
 0x4af   : > { %v1757_v45 = vpop.permute.xlu1 %1756 }
 0x4b0   : > { %v1767_v47 = vsel %vm1765_vm7, %v1764_v46, %v1757_v45 }
 0x4b1   : > { %3235 = vmatmul.msk.f32.gmra.mxu2 %vm1050_vm0, %v1767_v47  ;;  %v4713_v47 = vld [vmem:[%s5013_s22] sm:$0x7] }
 0x52b   : > { %v1799_v48 = vpop.f32.mrf.mxu2 }
 0x52c   : > { %v1800_v49 = vadd.f32 %v3499_v39, %v1799_v48 }
 0x52e   : > { %v1805_v50 = vadd.f32 %v1800_v49, %v4477_v2  ;;  %v1910_v2 = vld [vmem:[#allocation17 + $0x18] sm:$0xff] }
 0x52f   : > { %1939 = vmatpush.msra.mxu0 %v1910_v2  ;;  %v4720_v49 = vld [vmem:[%s5014_s23] sm:$0x7] }
 0x530   : > { %v1807_v51 = vsel %vm1050_vm0, %v1805_v50, 0.0 }
 0x531   : > { %1808 = vadd.xlane.f32.xlu0 %v1807_v51  ;;  %1940 = vmatpush.msra.mxu0 %v1909_v60  ;;  %v1858_v51 = vperm.slane %v4713_v47, 0 }
 0x533   : > { %1941 = vmatpush.msra.mxu0 %v1908_v63 }
 0x534   : > { %v1802_v52 = vpop.f32.mrf.mxu2 }
 0x535   : > { %v1803_v53 = vadd.f32 %v3499_v39, %v1802_v52  ;;  %1942 = vmatpush.msra.mxu0 %v1907_v26 }
 0x537   : > { %v1806_v54 = vadd.f32 %v1803_v53, %v4485_v7  ;;  %v4668_v7 = vld [vmem:[%s4665_s18] sm:$0xff] }
 0x538   : > { %v1903_v0 = vadd.f32 %v1034_v61, %v4668_v7 }
 0x539   : > { %v1810_v55 = vsel %vm1050_vm0, %v1806_v54, 0.0 }
 0x53a   : > { %1811 = vadd.xlane.f32.xlu2 %v1810_v55  ;;  %3238 = vmatmul.msk.f32.vlgmr.msra.gmra.mxu0 %vm1050_vm0, %v1903_v0 }
 0x542   : > { %3239 = vmatmul.msk.f32.gmra.mxu0 %vm1050_vm0, %v1904_v11 }
 0x54a   : > { %3240 = vmatmul.msk.f32.gmra.mxu0 %vm1050_vm0, %v1905_v33 }
 0x552   : > { %3241 = vmatmul.msk.f32.gmra.mxu0 %vm1050_vm0, %v1906_v25  ;;  %v1958_v25 = vld [vmem:[#allocation19 + $0x10] sm:$0xff] }
 0x553   : > { %1989 = vmatpush.msra.mxu1 %v1958_v25 }
 0x555   : > { %1990 = vmatpush.msra.mxu1 %v1957_v27 }
 0x557   : > { %1991 = vmatpush.msra.mxu1 %v1956_v28 }
 0x558   : > { %3242 = vmatmul.msk.f32.vlgmr.msra.gmra.mxu1 %vm1050_vm0, %v4668_v7 }
 0x560   : > { %3243 = vmatmul.msk.f32.gmra.mxu1 %vm1050_vm0, %v4674_v5 }
 0x568   : > { %3244 = vmatmul.msk.f32.gmra.mxu1 %vm1050_vm0, %v4690_v21 }
 0x570   : > { %3245 = vmatmul.msk.f32.gmra.mxu1 %vm1050_vm0, %v4696_v22 }
 0x5a4   : > { %v1809_v12 = vpop.xlane.xlu0 %1808 }
 0x5a5   : > { %v1820_v13 = vmul.f32 %v4678_v62, %v1809_v12 }
 0x5a7   : > { %v1822_v14 = vsub.f32 %v1805_v50, %v1820_v13 }
 0x5a9   : > { %v1824_v15 = vmul.f32 %v1822_v14, %v1822_v14 }
 0x5ab   : > { %v1826_v16 = vsel %vm1050_vm0, %v1824_v15, 0.0 }
 0x5ac   : > { %1827 = vadd.xlane.f32.xlu1 %v1826_v16 }
 0x5ad   : > { %v1812_v17 = vpop.xlane.xlu2 %1811 }
 0x5ae   : > { %v1821_v19 = vmul.f32 %v4678_v62, %v1812_v17 }
 0x5b0   : > { %v4684_v32 = vsub.f32 %v1806_v54, %v1821_v19  ;;  %v1861_v54 = vperm.slane %v4720_v49, 0 }
 0x5b2   : > { %v1825_v20 = vmul.f32 %v4684_v32, %v4684_v32 }
 0x5b4   : > { %v1829_v10 = vsel %vm1050_vm0, %v1825_v20, 0.0 }
 0x5b5   : > { %1830 = vadd.xlane.f32.xlu0 %v1829_v10 }
 0x5b7   : > { %v1944_v36 = vpop.f32.mrf.mxu0 }
 0x5b8   : > { %v4706_v40 = vadd.f32 %v3500_v35, %v1944_v36 }
 0x5bf   : > { %v1947_v45 = vpop.f32.mrf.mxu0 }
 0x5c0   : > { %v1948_v46 = vadd.f32 %v3500_v35, %v1947_v45 }
 0x5c2   : > { %2025 = vrot.lane.b32.xlu2 %v1948_v46, %s4087_s25  ;;  %3246 = vmatpush.xpose.msk.msra.mxu2 %vm1153_vm1, %v1948_v46 }
 0x5c5   : > { %2023 = vrot.lane.b32.xlu1 %v4706_v40, %s4087_s25 }
 0x5c6   : > { %3247 = vmatpush.xpose.msk.msra.mxu2 %vm1153_vm1, %v4706_v40 }
 0x5c7   : > { %v1950_v9 = vpop.f32.mrf.mxu0 }
 0x5c8   : > { %v1951_v11 = vadd.f32 %v3500_v35, %v1950_v9 }
 0x5c9   : > { %2033 = vrot.lane.b32.xlu0 %v1948_v46, %s4086_s17 }
 0x5cd   : > { %2027 = vrot.lane.b32.xlu1 %v1951_v11, %s4087_s25 }
 0x5cf   : > { %v1953_v12 = vpop.f32.mrf.mxu0 }
 0x61c   : > { %v2026_v15 = vpop.permute.xlu2 %2025 }
 0x61d   : > { %3252 = vmatpush.xpose.msk.msrb.mxu2 %vm1153_vm1, %v2026_v15 }
 0x61f   : > { %v1828_v29 = vpop.xlane.xlu1 %1827 }
 0x620   : > { %v1832_v31 = vmul.f32 %v1828_v29, %v4678_v62 }
 0x622   : > { %v1834_v34 = vadd.f32 1e-05, %v1832_v31 }
 0x624   : > { %3540 = vrsqrt.f32 %v1834_v34  ;;  %vm1842_vm10 = vweird.f32 %v1834_v34 }
 0x628   : > { %v1831_v37 = vpop.xlane.xlu0 %1830 }
 0x629   : > { %v1833_v38 = vmul.f32 %v1831_v37, %v4678_v62 }
 0x62a   : > { %v3541_v41 = vpop.eup %3540 }
 0x62b   : > { %v1837_v42 = vmul.f32 %v3541_v41, %v1834_v34  ;;  %v1835_v43 = vadd.f32 1e-05, %v1833_v38  ;;  %vm1843_vm9 = vweird.f32 %v3541_v41 }
 0x62c   : > { %vm1844_vm11 = vmor %vm1842_vm10, %vm1843_vm9 }
 0x62d   : > { %v1838_v44 = vmul.f32 %v3541_v41, %v1837_v42  ;;  %3542 = vrsqrt.f32 %v1835_v43  ;;  %vm1852_vm13 = vweird.f32 %v1835_v43  ;;  %v1993_v42 = vpop.f32.mrf.mxu1 }
 0x62f   : > { %v1839_v18 = vmul.f32 0.5, %v1838_v44 }
 0x631   : > { %v1840_v39 = vsub.f32 1.5, %v1839_v18 }
 0x633   : > { %v3543_v48 = vpop.eup %3542  ;;  %v1841_v50 = vmul.f32 %v3541_v41, %v1840_v39 }
 0x634   : > { %v1847_v52 = vmul.f32 %v3543_v48, %v1835_v43  ;;  %vm1853_vm12 = vweird.f32 %v3543_v48  ;;  %v3502_v43 = vld [vmem:[%s5081_s15] ss:$0 sm:$0xff] }
 0x635   : > { %v1845_v53 = vsel %vm1844_vm11, %v3541_v41, %v1841_v50  ;;  %vm1854_vm14 = vmor %vm1852_vm13, %vm1853_vm12  ;;  %v1996_v44 = vpop.f32.mrf.mxu1  ;;  %v1994_v18 = vadd.f32 %v3502_v43, %v1993_v42 }
 0x636   : > { %v1856_v55 = vmul.f32 %v1845_v53, %v1822_v14  ;;  %v1848_v56 = vmul.f32 %v3543_v48, %v1847_v52  ;;  %v1997_v45 = vadd.f32 %v3502_v43, %v1996_v44 }
 0x637   : > { %v2024_v16 = vpop.permute.xlu1 %2023 }
 0x638   : > { %v1859_v58 = vmul.f32 %v1858_v51, %v1856_v55  ;;  %v1849_v59 = vmul.f32 0.5, %v1848_v56  ;;  %3253 = vmatpush.xpose.msk.msrb.mxu2 %vm1153_vm1, %v2024_v16 }
 0x63a   : > { %v4727_v2 = vadd.f32 %v1861_v54, %v1859_v58  ;;  %v1850_v60 = vsub.f32 1.5, %v1849_v59 }
 0x63b   : > { %v2034_v17 = vpop.permute.xlu0 %2033 }
 0x63c   : > { %v1851_v57 = vmul.f32 %v3543_v48, %v1850_v60  ;;  %v1864_v61 = vadd.f32 %v4727_v2, %v4480_v3  ;;  %v1954_v3 = vadd.f32 %v3500_v35, %v1953_v12 }
 0x63d   : > { %v1999_v39 = vpop.f32.mrf.mxu1 }
 0x63e   : > { %v1855_v63 = vsel %vm1854_vm14, %v3543_v48, %v1851_v57  ;;  %3236 = vmatmul.msk.f32.vlgmr.msrb.gmra.mxu3 %vm1050_vm0, %v1864_v61  ;;  %2029 = vrot.lane.b32.xlu2 %v1954_v3, %s4087_s25 }
 0x63f   : > { %v1857_v26 = vmul.f32 %v1855_v63, %v4684_v32  ;;  %3249 = vmatpush.xpose.msk.msra.mxu3 %vm1153_vm1, %v1954_v3  ;;  %v2028_v6 = vpop.permute.xlu1 %2027 }
 0x641   : > { %v1860_v0 = vmul.f32 %v1858_v51, %v1857_v26  ;;  %v2000_v51 = vadd.f32 %v3502_v43, %v1999_v39 }
 0x643   : > { %v4733_v1 = vadd.f32 %v1861_v54, %v1860_v0  ;;  %3250 = vmatpush.xpose.msk.msra.mxu3 %vm1153_vm1, %v1951_v11 }
 0x645   : > { %v1865_v4 = vadd.f32 %v4733_v1, %v4488_v8  ;;  %v3501_v8 = vld [vmem:[#allocation16] ss:$0 sm:$0xff]  ;;  %v2002_v48 = vpop.f32.mrf.mxu1 }
 0x646   : > { %2031 = vrot.lane.b32.xlu2 %v4706_v40, %s4086_s17  ;;  %v2003_v50 = vadd.f32 %v3502_v43, %v2002_v48 }
 0x647   : > { %3237 = vmatmul.msk.f32.gmra.mxu3 %vm1050_vm0, %v1865_v4 }
 0x648   : > { %v4792_v52 = vpack.i.bf16 %v2000_v51, %v2003_v50 }
 0x64e   : > { %2037 = vrot.lane.b32.xlu2 %v1954_v3, %s4086_s17 }
 0x698   : > { %v2030_v20 = vpop.permute.xlu2 %2029 }
 0x699   : > { %3255 = vmatpush.xpose.msk.msrb.mxu3 %vm1153_vm1, %v2030_v20 }
 0x69d   : > { %3256 = vmatpush.xpose.msk.msrb.mxu3 %vm1153_vm1, %v2028_v6 }
 0x6a0   : > { %v2032_v10 = vpop.permute.xlu2 %2031 }
 0x6a8   : > { %v2038_v33 = vpop.permute.xlu2 %2037 }
 0x6c1   : > { %v1897_v13 = vpop.f32.mrf.mxu3 }
 0x6c2   : > { %v1898_v14 = vadd.f32 %v3501_v8, %v1897_v13 }
 0x6c4   : > { %2011 = vrot.lane.b32.xlu1 %v1898_v14, %s4086_s17  ;;  %3248 = vmatmul.msk.f32.vlgmr.msra.gmra.mxu2 %vm1153_vm1, %v1898_v14 }
 0x6c5   : > { %2007 = vrot.lane.b32.xlu0 %v1898_v14, %s4087_s25  ;;  %3258 = vmatpush.xpose.msk.msra.mxu2 %vm1153_vm1, %v2034_v17 }
 0x6c9   : > { %3259 = vmatpush.xpose.msk.msra.mxu2 %vm1153_vm1, %v2032_v10 }
 0x6ca   : > { %v1900_v19 = vpop.f32.mrf.mxu3 }
 0x6cb   : > { %v1901_v32 = vadd.f32 %v3501_v8, %v1900_v19 }
 0x6cc   : > { %2041 = vrot.lane.b32.xlu1 %v1948_v46, %s4085_s12  ;;  %v4790_v46 = vpack.i.bf16 %v1994_v18, %v1997_v45 }
 0x6cd   : > { %2013 = vrot.lane.b32.xlu2 %v1901_v32, %s4086_s17  ;;  %2009 = vrot.lane.b32.xlu0 %v1901_v32, %s4087_s25 }
 0x6ce   : > { %3251 = vmatmul.msk.f32.vlgmr.msra.gmra.mxu3 %vm1153_vm1, %v1901_v32 }
 0x6cf   : > { %3261 = vmatpush.xpose.msk.msra.mxu3 %vm1153_vm1, %v2038_v33 }
 0x6d4   : > { %2015 = vrot.lane.b32.xlu1 %v1898_v14, %s4085_s12 }
 0x6d5   : > { %2045 = vrot.lane.b32.xlu2 %v1954_v3, %s4085_s12  ;;  %2035 = vrot.lane.b32.xlu0 %v1951_v11, %s4086_s17 }
 0x6dc   : > { %2017 = vrot.lane.b32.xlu1 %v1901_v32, %s4085_s12 }
 0x6dd   : > { %2039 = vrot.lane.b32.xlu0 %v4706_v40, %s4085_s12 }
 0x6e5   : > { %2043 = vrot.lane.b32.xlu0 %v1951_v11, %s4085_s12 }
 0x727   : > { %v2014_v24 = vpop.permute.xlu2 %2013 }
 0x72f   : > { %v2046_v29 = vpop.permute.xlu2 %2045 }
 0x730   : > { %3267 = vmatpush.xpose.msk.msrb.mxu1 %vm1153_vm1, %v2046_v29 }
 0x736   : > { %v2012_v30 = vpop.permute.xlu1 %2011 }
 0x737   : > { %v2008_v31 = vpop.permute.xlu0 %2007 }
 0x738   : > { %3254 = vmatmul.msk.f32.vlgmr.msrb.gmra.mxu2 %vm1153_vm1, %v2008_v31 }
 0x739   : > { %2504 = vmatpush.msrb.mxu2 %v1997_v45 }
 0x73b   : > { %2505 = vmatpush.msrb.mxu2 %v1994_v18 }
 0x73e   : > { %v2042_v34 = vpop.permute.xlu1 %2041 }
 0x73f   : > { %v2010_v35 = vpop.permute.xlu0 %2009  ;;  %3264 = vmatpush.xpose.msk.msrb.mxu0 %vm1153_vm1, %v2042_v34 }
 0x740   : > { %3257 = vmatmul.msk.f32.vlgmr.msrb.gmra.mxu3 %vm1153_vm1, %v2010_v35  ;;  %3260 = vmatmul.msk.f32.vlgmr.msra.gmra.mxu2 %vm1153_vm1, %v2012_v30 }
 0x746   : > { %v2016_v36 = vpop.permute.xlu1 %2015 }
 0x747   : > { %v2036_v7 = vpop.permute.xlu0 %2035  ;;  %v2110_v5 = vpop.f32.mrf.mxu2 }
 0x748   : > { %3262 = vmatpush.xpose.msk.msra.mxu3 %vm1153_vm1, %v2036_v7  ;;  %v2295_v21 = vsel %vm1762_vm6, %v2110_v5, -inf }
 0x749   : > { %2296 = vmax.xlane.f32.xlu2 %v2295_v21 }
 0x74b   : > { %3263 = vmatmul.msk.f32.vlgmr.msra.gmra.mxu3 %vm1153_vm1, %v2014_v24 }
 0x74c   : > { %2527 = vmatpush.msrb.mxu3 %v2003_v50 }
 0x74e   : > { %v2018_v41 = vpop.permute.xlu1 %2017  ;;  %2528 = vmatpush.msrb.mxu3 %v2000_v51 }
 0x74f   : > { %v2040_v22 = vpop.permute.xlu0 %2039 }
 0x750   : > { %3265 = vmatpush.xpose.msk.msrb.mxu0 %vm1153_vm1, %v2040_v22 }
 0x751   : > { %v2136_v37 = vpop.f32.mrf.mxu3 }
 0x752   : > { %v2298_v38 = vsel %vm1762_vm6, %v2136_v37, -inf }
 0x753   : > { %2299 = vmax.xlane.f32.xlu1 %v2298_v38  ;;  %3266 = vmatmul.msk.f32.vlgmr.msrb.gmra.mxu0 %vm1153_vm1, %v2016_v36 }
 0x757   : > { %v2044_v40 = vpop.permute.xlu0 %2043 }
 0x758   : > { %3268 = vmatpush.xpose.msk.msrb.mxu1 %vm1153_vm1, %v2044_v40 }
 0x75b   : > { %3269 = vmatmul.msk.f32.vlgmr.msrb.gmra.mxu1 %vm1153_vm1, %v2018_v41 }
 0x7bb   : > { %v2162_v53 = vpop.f32.mrf.mxu2 }
 0x7bc   : > { %v2301_v54 = vsel %vm1762_vm6, %v2162_v53, -inf  ;;  %v2297_v60 = vpop.xlane.xlu2 %2296 }
 0x7bd   : > { %2302 = vmax.xlane.f32.xlu0 %v2301_v54  ;;  %v2319_v57 = vsub.f32 %v2110_v5, %v2297_v60 }
 0x7bf   : > { %v2327_v61 = vmul.f32 1.442695, %v2319_v57 }
 0x7c1   : > { %3544 = vpow2.f32 %v2327_v61 }
 0x7c3   : > { %v4795_v55 = vpop.f32.mrf.mxu3  ;;  %v2214_v56 = vpop.f32.mrf.mxu2 }
 0x7c4   : > { %v2304_v58 = vsel %vm1762_vm6, %v4795_v55, -inf  ;;  %v2307_v59 = vsel %vm1762_vm6, %v2214_v56, -inf }
 0x7c5   : > { %2305 = vmax.xlane.f32.xlu0 %v2304_v58  ;;  %2308 = vmax.xlane.f32.xlu2 %v2307_v59 }
 0x7c6   : > { %v2300_v8 = vpop.xlane.xlu1 %2299 }
 0x7c7   : > { %v4802_v9 = vpop.eup %3544  ;;  %v2320_v13 = vsub.f32 %v2136_v37, %v2300_v8 }
 0x7c8   : > { %v2343_v3 = vsel %vm1762_vm6, %v4802_v9, 0.0 }
 0x7c9   : > { %v2329_v14 = vmul.f32 1.442695, %v2320_v13 }
 0x7cb   : > { %3546 = vpow2.f32 %v2329_v14 }
 0x7ce   : > { %v2240_v63 = vpop.f32.mrf.mxu3 }
 0x7cf   : > { %v2310_v26 = vsel %vm1762_vm6, %v2240_v63, -inf }
 0x7d0   : > { %v2266_v0 = vpop.f32.mrf.mxu0  ;;  %2311 = vmax.xlane.f32.xlu2 %v2310_v26 }
 0x7d1   : > { %v2313_v4 = vsel %vm1762_vm6, %v2266_v0, -inf  ;;  %v4811_v15 = vpop.eup %3546 }
 0x7d2   : > { %2314 = vmax.xlane.f32.xlu1 %v2313_v4  ;;  %v2346_v16 = vsel %vm1762_vm6, %v4811_v15, 0.0 }
 0x7d8   : > { %v2292_v11 = vpop.f32.mrf.mxu1 }
 0x7d9   : > { %v2316_v12 = vsel %vm1762_vm6, %v2292_v11, -inf }
 0x7da   : > { %2317 = vmax.xlane.f32.xlu0 %v2316_v12  ;;  %2344 = vadd.xlane.f32.xlu1 %v2343_v3 }
 0x7ee   : > { %3468 = vrot.lane.b32.xlu0 %v4790_v46, %s4087_s25 }
 0x7f3   : > { %3473 = vrot.lane.b32.xlu1 %v4790_v46, %s4086_s17 }
 0x818   : > { %2347 = vadd.xlane.f32.xlu0 %v2346_v16 }
 0x830   : > { %v2303_v17 = vpop.xlane.xlu0 %2302 }
 0x831   : > { %v2321_v19 = vsub.f32 %v2162_v53, %v2303_v17 }
 0x833   : > { %v2331_v32 = vmul.f32 1.442695, %v2321_v19 }
 0x835   : > { %3548 = vpow2.f32 %v2331_v32 }
 0x838   : > { %v2309_v20 = vpop.xlane.xlu2 %2308  ;;  %v2306_v24 = vpop.xlane.xlu0 %2305 }
 0x839   : > { %v2323_v10 = vsub.f32 %v2214_v56, %v2309_v20  ;;  %v2322_v38 = vsub.f32 %v4795_v55, %v2306_v24 }
 0x83b   : > { %v4815_v6 = vpop.eup %3548  ;;  %v2335_v33 = vmul.f32 1.442695, %v2323_v10  ;;  %v2333_v43 = vmul.f32 1.442695, %v2322_v38 }
 0x83c   : > { %v2349_v23 = vsel %vm1762_vm6, %v4815_v6, 0.0 }
 0x83d   : > { %2350 = vadd.xlane.f32.xlu2 %v2349_v23  ;;  %3550 = vpow2.f32 %v2335_v33 }
 0x843   : > { %v2312_v25 = vpop.xlane.xlu2 %2311  ;;  %v4819_v27 = vpop.eup %3550 }
 0x844   : > { %v2324_v28 = vsub.f32 %v2240_v63, %v2312_v25  ;;  %v2355_v30 = vsel %vm1762_vm6, %v4819_v27, 0.0 }
 0x845   : > { %v2315_v29 = vpop.xlane.xlu1 %2314  ;;  %2356 = vadd.xlane.f32.xlu1 %v2355_v30 }
 0x846   : > { %v2337_v31 = vmul.f32 1.442695, %v2324_v28  ;;  %v2325_v34 = vsub.f32 %v2266_v0, %v2315_v29 }
 0x848   : > { %3552 = vpow2.f32 %v2337_v31  ;;  %v2339_v35 = vmul.f32 1.442695, %v2325_v34 }
 0x84a   : > { %3554 = vpow2.f32 %v2339_v35 }
 0x84d   : > { %v2318_v7 = vpop.xlane.xlu0 %2317  ;;  %v2345_v5 = vpop.xlane.xlu1 %2344 }
 0x84e   : > { %v4823_v21 = vpop.eup %3552  ;;  %v2326_v22 = vsub.f32 %v2292_v11, %v2318_v7  ;;  %3556 = vrcp.f32 %v2345_v5  ;;  %v2378_v39 = vand.u32 2147483648, %v2345_v5  ;;  %v2376_v50 = vand.u32 2147483647, %v2345_v5 }
 0x84f   : > { %v2358_v36 = vsel %vm1762_vm6, %v4823_v21, 0.0  ;;  %vm2372_vm2 = vweird.f32 %v2345_v5 }
 0x850   : > { %v4827_v37 = vpop.eup %3554  ;;  %v2341_v40 = vmul.f32 1.442695, %v2326_v22  ;;  %2359 = vadd.xlane.f32.xlu1 %v2358_v36  ;;  %v2379_v54 = vor.u32 1.1754944e-38, %v2378_v39  ;;  %vm2377_vm4 = vcmp.eq.f32.partialorder %v2376_v50, 8.507059e+37 }
 0x851   : > { %v2361_v41 = vsel %vm1762_vm6, %v4827_v37, 0.0 }
 0x852   : > { %3558 = vpow2.f32 %v2341_v40  ;;  %2362 = vadd.xlane.f32.xlu0 %v2361_v41 }
 0x853   : > { %3560 = vpow2.f32 %v2333_v43 }
 0x854   : > { %v3557_v42 = vpop.eup %3556 }
 0x855   : > { %v2368_v44 = vmul.f32 %v3557_v42, %v2345_v5  ;;  %vm2373_vm15 = vweird.f32 %v3557_v42 }
 0x856   : > { %vm2374_vm3 = vmor %vm2372_vm2, %vm2373_vm15 }
 0x857   : > { %v2369_v18 = vsub.f32 1.0, %v2368_v44 }
 0x858   : > { %v4832_v45 = vpop.eup %3558 }
 0x859   : > { %v2370_v48 = vmul.f32 %v3557_v42, %v2369_v18  ;;  %v2364_v51 = vsel %vm1762_vm6, %v4832_v45, 0.0  ;;  %v4836_v56 = vpop.eup %3560 }
 0x85a   : > { %2365 = vadd.xlane.f32.xlu2 %v2364_v51  ;;  %v2352_v61 = vsel %vm1762_vm6, %v4836_v56, 0.0 }
 0x85b   : > { %v2371_v53 = vadd.f32 %v3557_v42, %v2370_v48 }
 0x85d   : > { %v2375_v55 = vsel %vm2374_vm3, %v3557_v42, %v2371_v53 }
 0x85e   : > { %v2380_v58 = vsel %vm2377_vm4, %v2379_v54, %v2375_v55 }
 0x85f   : > { %v2479_v59 = vmul.f32 %v4802_v9, %v2380_v58 }
 0x860   : > { %v3469_v60 = vpop.permute.xlu0 %3468 }
 0x861   : > { %v3470_v57 = vunpack.i.l.bf16 %v3469_v60  ;;  %3270 = vmatmul.msk.f32.vlgmr.msrb.gmra.mxu2 %vm1762_vm6, %v2479_v59  ;;  %v3471_v63 = vunpack.i.h.bf16 %v3469_v60 }
 0x862   : > { %2353 = vadd.xlane.f32.xlu2 %v2352_v61 }
 0x863   : > { %2550 = vmatpush.msra.mxu0 %v3470_v57 }
 0x865   : > { %2551 = vmatpush.msra.mxu0 %v3471_v63  ;;  %v3474_v26 = vpop.permute.xlu1 %3473 }
 0x866   : > { %v3475_v0 = vunpack.i.l.bf16 %v3474_v26  ;;  %3483 = vrot.lane.b32.xlu0 %v4790_v46, %s4085_s12  ;;  %v3476_v4 = vunpack.i.h.bf16 %v3474_v26 }
 0x868   : > { %2596 = vmatpush.msra.mxu2 %v3475_v0 }
 0x869   : > { %3488 = vrot.lane.b32.xlu1 %v4792_v52, %s4086_s17  ;;  %s5086_s17 = sld [smem:[#allocation57_spill]] }
 0x86a   : > { %2597 = vmatpush.msra.mxu2 %v3476_v4 }
 0x86e   : > { %3493 = vrot.lane.b32.xlu0 %v4792_v52, %s4085_s12 }
 0x87a   : > { %3478 = vrot.lane.b32.xlu2 %v4792_v52, %s4087_s25  ;;  %s5082_s25 = sld [smem:[#allocation52_spill]] }
 0x88b   : > { %v2348_v9 = vpop.xlane.xlu0 %2347 }
 0x88c   : > { %3562 = vrcp.f32 %v2348_v9  ;;  %v2392_v8 = vand.u32 2147483648, %v2348_v9  ;;  %v2390_v46 = vand.u32 2147483647, %v2348_v9  ;;  %vm2386_vm8 = vweird.f32 %v2348_v9 }
 0x88e   : > { %v2393_v16 = vor.u32 1.1754944e-38, %v2392_v8  ;;  %vm2391_vm10 = vcmp.eq.f32.partialorder %v2390_v46, 8.507059e+37 }
 0x892   : > { %v3563_v11 = vpop.eup %3562 }
 0x893   : > { %v2382_v12 = vmul.f32 %v3563_v11, %v2348_v9  ;;  %vm2387_vm5 = vweird.f32 %v3563_v11 }
 0x894   : > { %vm2388_vm9 = vmor %vm2386_vm8, %vm2387_vm5 }
 0x895   : > { %v2383_v3 = vsub.f32 1.0, %v2382_v12 }
 0x897   : > { %v2384_v13 = vmul.f32 %v3563_v11, %v2383_v3 }
 0x899   : > { %v2385_v14 = vadd.f32 %v3563_v11, %v2384_v13 }
 0x89b   : > { %v2389_v17 = vsel %vm2388_vm9, %v3563_v11, %v2385_v14 }
 0x89c   : > { %v2394_v19 = vsel %vm2391_vm10, %v2393_v16, %v2389_v17 }
 0x89d   : > { %v2480_v32 = vmul.f32 %v4811_v15, %v2394_v19 }
 0x89f   : > { %3271 = vmatmul.msk.f32.vlgmr.msrb.gmra.mxu3 %vm1762_vm6, %v2480_v32 }
 0x8b0   : > { %v2351_v52 = vpop.xlane.xlu2 %2350 }
 0x8b1   : > { %3564 = vrcp.f32 %v2351_v52  ;;  %v2406_v25 = vand.u32 2147483648, %v2351_v52  ;;  %v2404_v24 = vand.u32 2147483647, %v2351_v52  ;;  %vm2400_vm12 = vweird.f32 %v2351_v52 }
 0x8b3   : > { %v2407_v30 = vor.u32 1.1754944e-38, %v2406_v25  ;;  %vm2405_vm14 = vcmp.eq.f32.partialorder %v2404_v24, 8.507059e+37 }
 0x8b7   : > { %v3565_v20 = vpop.eup %3564 }
 0x8b8   : > { %v2396_v10 = vmul.f32 %v3565_v20, %v2351_v52  ;;  %v2357_v33 = vpop.xlane.xlu1 %2356  ;;  %vm2401_vm11 = vweird.f32 %v3565_v20 }
 0x8b9   : > { %3566 = vrcp.f32 %v2357_v33  ;;  %vm2402_vm13 = vmor %vm2400_vm12, %vm2401_vm11  ;;  %v2434_v36 = vand.u32 2147483648, %v2357_v33  ;;  %v2432_v40 = vand.u32 2147483647, %v2357_v33  ;;  %vm2428_vm2 = vweird.f32 %v2357_v33 }
 0x8ba   : > { %v2397_v23 = vsub.f32 1.0, %v2396_v10 }
 0x8bb   : > { %v2435_v43 = vor.u32 1.1754944e-38, %v2434_v36  ;;  %vm2433_vm4 = vcmp.eq.f32.partialorder %v2432_v40, 8.507059e+37 }
 0x8bc   : > { %v2398_v28 = vmul.f32 %v3565_v20, %v2397_v23 }
 0x8be   : > { %v2399_v29 = vadd.f32 %v3565_v20, %v2398_v28 }
 0x8bf   : > { %v3567_v31 = vpop.eup %3566 }
 0x8c0   : > { %v2403_v34 = vsel %vm2402_vm13, %v3565_v20, %v2399_v29  ;;  %v2424_v35 = vmul.f32 %v3567_v31, %v2357_v33  ;;  %vm2429_vm15 = vweird.f32 %v3567_v31 }
 0x8c1   : > { %v2408_v15 = vsel %vm2405_vm14, %v2407_v30, %v2403_v34  ;;  %vm2430_vm3 = vmor %vm2428_vm2, %vm2429_vm15 }
 0x8c2   : > { %v2481_v7 = vmul.f32 %v4815_v6, %v2408_v15  ;;  %v2425_v5 = vsub.f32 1.0, %v2424_v35 }
 0x8c3   : > { %v2360_v22 = vpop.xlane.xlu1 %2359 }
 0x8c4   : > { %3568 = vrcp.f32 %v2360_v22  ;;  %3272 = vmatmul.msk.f32.vlgmr.msra.gmra.mxu0 %vm1762_vm6, %v2481_v7  ;;  %v2426_v38 = vmul.f32 %v3567_v31, %v2425_v5  ;;  %v2448_v0 = vand.u32 2147483648, %v2360_v22  ;;  %vm2442_vm11 = vweird.f32 %v2360_v22 }
 0x8c5   : > { %v2363_v41 = vpop.xlane.xlu0 %2362  ;;  %v2446_v9 = vand.u32 2147483647, %v2360_v22 }
 0x8c6   : > { %3570 = vrcp.f32 %v2363_v41  ;;  %v2427_v42 = vadd.f32 %v3567_v31, %v2426_v38  ;;  %v2462_v57 = vand.u32 2147483648, %v2363_v41  ;;  %vm2456_vm8 = vweird.f32 %v2363_v41 }
 0x8c7   : > { %v2460_v61 = vand.u32 2147483647, %v2363_v41  ;;  %v2449_v14 = vor.u32 1.1754944e-38, %v2448_v0  ;;  %vm2447_vm14 = vcmp.eq.f32.partialorder %v2446_v9, 8.507059e+37 }
 0x8c8   : > { %v2431_v44 = vsel %vm2430_vm3, %v3567_v31, %v2427_v42  ;;  %v2463_v11 = vor.u32 1.1754944e-38, %v2462_v57  ;;  %v2701_v57 = vld [vmem:[#allocation20] sm:$0xff] }
 0x8c9   : > { %v2436_v39 = vsel %vm2433_vm4, %v2435_v43, %v2431_v44  ;;  %vm2461_vm13 = vcmp.eq.f32.partialorder %v2460_v61, 8.507059e+37 }
 0x8ca   : > { %v3569_v18 = vpop.eup %3568  ;;  %v2483_v48 = vmul.f32 %v4819_v27, %v2436_v39 }
 0x8cb   : > { %v2438_v6 = vmul.f32 %v3569_v18, %v2360_v22  ;;  %vm2443_vm9 = vweird.f32 %v3569_v18 }
 0x8cc   : > { %v3571_v50 = vpop.eup %3570  ;;  %3274 = vmatmul.msk.f32.vlgmr.msra.gmra.mxu2 %vm1762_vm6, %v2483_v48  ;;  %vm2444_vm12 = vmor %vm2442_vm11, %vm2443_vm9 }
 0x8cd   : > { %v2439_v51 = vsub.f32 1.0, %v2438_v6  ;;  %v2452_v53 = vmul.f32 %v3571_v50, %v2363_v41  ;;  %v4856_v54 = vpop.xlane.xlu2 %2365  ;;  %vm2457_vm5 = vweird.f32 %v3571_v50 }
 0x8ce   : > { %3572 = vrcp.f32 %v4856_v54  ;;  %vm2458_vm10 = vmor %vm2456_vm8, %vm2457_vm5  ;;  %v2476_v40 = vand.u32 2147483648, %v4856_v54  ;;  %vm2470_vm8 = vweird.f32 %v4856_v54  ;;  %v2474_v42 = vand.u32 2147483647, %v4856_v54 }
 0x8cf   : > { %v2453_v55 = vsub.f32 1.0, %v2452_v53  ;;  %v2440_v58 = vmul.f32 %v3569_v18, %v2439_v51 }
 0x8d1   : > { %v2454_v59 = vmul.f32 %v3571_v50, %v2453_v55  ;;  %v2441_v63 = vadd.f32 %v3569_v18, %v2440_v58  ;;  %v2704_v58 = vld [vmem:[#allocation20 + $0x18] sm:$0xff] }
 0x8d2   : > { %2727 = vmatpush.msrb.mxu2 %v2704_v58 }
 0x8d3   : > { %v2455_v60 = vadd.f32 %v3571_v50, %v2454_v59  ;;  %v2445_v3 = vsel %vm2444_vm12, %v3569_v18, %v2441_v63  ;;  %v2477_v18 = vor.u32 1.1754944e-38, %v2476_v40  ;;  %v2703_v59 = vld [vmem:[#allocation20 + $0x10] sm:$0xff] }
 0x8d4   : > { %v4859_v26 = vpop.eup %3572  ;;  %v2450_v32 = vsel %vm2447_vm14, %v2449_v14, %v2445_v3  ;;  %2728 = vmatpush.msrb.mxu2 %v2703_v59  ;;  %vm2841_vm14 = vcmask 523264  }
 0x8d5   : > { %v2354_v27 = vpop.xlane.xlu2 %2353  ;;  %v2459_v4 = vsel %vm2458_vm10, %v3571_v50, %v2455_v60  ;;  %v2466_v13 = vmul.f32 %v4859_v26, %v4856_v54  ;;  %v2484_v29 = vmul.f32 %v4823_v21, %v2450_v32  ;;  %vm2471_vm4 = vweird.f32 %v4859_v26  ;;  %v2702_v60 = vld [vmem:[#allocation20 + $0x8] sm:$0xff] }
 0x8d6   : > { %3574 = vrcp.f32 %v2354_v27  ;;  %v2464_v8 = vsel %vm2461_vm13, %v2463_v11, %v2459_v4  ;;  %v2418_v30 = vand.u32 2147483647, %v2354_v27  ;;  %v2420_v31 = vand.u32 2147483648, %v2354_v27  ;;  %vm2472_vm9 = vmor %vm2470_vm8, %vm2471_vm4  ;;  %2729 = vmatpush.msrb.mxu2 %v2702_v60 }
 0x8d7   : > { %v2485_v20 = vmul.f32 %v4827_v37, %v2464_v8  ;;  %v2467_v10 = vsub.f32 1.0, %v2466_v13  ;;  %vm2414_vm2 = vweird.f32 %v2354_v27  ;;  %vm2475_vm10 = vcmp.eq.f32.partialorder %v2474_v42, 8.507059e+37  ;;  %v2835_v42 = vld [vmem:[%s5083_s10 + $0x30] sm:$0xff] }
 0x8d8   : > { %v3484_v12 = vpop.permute.xlu0 %3483  ;;  %v2421_v21 = vor.u32 1.1754944e-38, %v2420_v31  ;;  %vm2419_vm5 = vcmp.eq.f32.partialorder %v2418_v30, 8.507059e+37  ;;  %2730 = vmatpush.msrb.mxu2 %v2701_v57 }
 0x8d9   : > { %v3485_v46 = vunpack.i.l.bf16 %v3484_v12  ;;  %v3486_v16 = vunpack.i.h.bf16 %v3484_v12  ;;  %v2468_v37 = vmul.f32 %v4859_v26, %v2467_v10 }
 0x8db   : > { %2642 = vmatpush.msrb.mxu0 %v3485_v46  ;;  %v3489_v17 = vpop.permute.xlu1 %3488  ;;  %v2469_v36 = vadd.f32 %v4859_v26, %v2468_v37  ;;  %v3503_v46 = vld [vmem:[%s5082_s25] ss:$0 sm:$0xff]  ;;  %v2791_v37 = vld [vmem:[#allocation22 + $0x8] sm:$0xff]  ;;  %s2937_s25 = scalar_lea.hbm %s5086_s17, %s3293_s8 }
 0x8dc   : > { %v3575_v19 = vpop.eup %3574  ;;  %v3490_v52 = vunpack.i.l.bf16 %v3489_v17  ;;  %v3491_v25 = vunpack.i.h.bf16 %v3489_v17 }
 0x8dd   : > { %v2410_v33 = vmul.f32 %v3575_v19, %v2354_v27  ;;  %2643 = vmatpush.msrb.mxu0 %v3486_v16  ;;  %v3479_v23 = vpop.permute.xlu2 %3478  ;;  %vm2415_vm15 = vweird.f32 %v3575_v19  ;;  %v2473_v44 = vsel %vm2472_vm9, %v4859_v26, %v2469_v36 }
 0x8de   : > { %v3480_v28 = vunpack.i.l.bf16 %v3479_v23  ;;  %2619 = vmatpush.msra.mxu3 %v3490_v52  ;;  %3276 = vmatmul.msk.f32.vlgmr.msrb.gmra.mxu0 %vm1762_vm6, %v2485_v20  ;;  %v3481_v34 = vunpack.i.h.bf16 %v3479_v23  ;;  %vm2416_vm3 = vmor %vm2414_vm2, %vm2415_vm15  ;;  %v2478_v39 = vsel %vm2475_vm10, %v2477_v18, %v2473_v44  ;;  %v2834_v44 = vld [vmem:[%s5083_s10 + $0x28] sm:$0xff] }
 0x8df   : > { %v2411_v24 = vsub.f32 1.0, %v2410_v33  ;;  %v2486_v6 = vmul.f32 %v4832_v45, %v2478_v39 }
 0x8e0   : > { %v3494_v15 = vpop.permute.xlu0 %3493  ;;  %2573 = vmatpush.msra.mxu1 %v3480_v28  ;;  %2620 = vmatpush.msra.mxu3 %v3491_v25 }
 0x8e1   : > { %v2412_v35 = vmul.f32 %v3575_v19, %v2411_v24  ;;  %v3495_v7 = vunpack.i.l.bf16 %v3494_v15  ;;  %3275 = vmatmul.msk.f32.vlgmr.msra.gmra.mxu3 %vm1762_vm6, %v2484_v29  ;;  %v3496_v22 = vunpack.i.h.bf16 %v3494_v15  ;;  %v2792_v15 = vld [vmem:[#allocation22 + $0x10] sm:$0xff] }
 0x8e2   : > { %2574 = vmatpush.msra.mxu1 %v3481_v34 }
 0x8e3   : > { %v2413_v5 = vadd.f32 %v3575_v19, %v2412_v35  ;;  %v2790_v35 = vld [vmem:[#allocation22] sm:$0xff] }
 0x8e4   : > { %2665 = vmatpush.msrb.mxu1 %v3495_v7  ;;  %v2507_v50 = vpop.f32.mrf.mxu2 }
 0x8e5   : > { %v2417_v38 = vsel %vm2416_vm3, %v3575_v19, %v2413_v5 }
 0x8e6   : > { %2666 = vmatpush.msrb.mxu1 %v3496_v22  ;;  %v2422_v41 = vsel %vm2419_vm5, %v2421_v21, %v2417_v38 }
 0x8e7   : > { %v2482_v43 = vmul.f32 %v4836_v56, %v2422_v41  ;;  %v2836_v41 = vld [vmem:[%s5083_s10 + $0x38] sm:$0xff] }
 0x8e8   : > { %2856 = vmatpush.msra.mxu0 %v2836_v41 }
 0x8e9   : > { %3273 = vmatmul.msk.f32.vlgmr.msra.gmra.mxu1 %vm1762_vm6, %v2482_v43 }
 0x8ea   : > { %2857 = vmatpush.msra.mxu0 %v2835_v42 }
 0x8ec   : > { %2858 = vmatpush.msra.mxu0 %v2834_v44  ;;  %v3584_v44 = vld [vmem:[%s5013_s22] sm:$0x7] }
 0x8f1   : > { %3277 = vmatmul.msk.f32.vlgmr.msrb.gmra.mxu1 %vm1762_vm6, %v2486_v6 }
 0x922   : > { %v2530_v53 = vpop.f32.mrf.mxu3 }
 0x941   : > { %v2553_v48 = vpop.f32.mrf.mxu0 }
 0x942   : > { %2673 = vrot.lane.b32.xlu2 %v2553_v48, %s4089_s2  ;;  %v2833_v48 = vld [vmem:[%s5083_s10 + $0x20] sm:$0xff] }
 0x943   : > { %2859 = vmatpush.msra.mxu0 %v2833_v48  ;;  %v3585_v48 = vld [vmem:[%s5014_s23] sm:$0x7] }
 0x94f   : > { %v2599_v51 = vpop.f32.mrf.mxu2 }
 0x950   : > { %2681 = vrot.lane.b32.xlu1 %v2599_v51, %s4090_s30 }
 0x95b   : > { %v2645_v56 = vpop.f32.mrf.mxu0 }
 0x95c   : > { %2689 = vrot.lane.b32.xlu0 %v2645_v56, %s4091_s3 }
 0x964   : > { %v2622_v54 = vpop.f32.mrf.mxu3 }
 0x965   : > { %2683 = vrot.lane.b32.xlu1 %v2622_v54, %s4090_s30  ;;  %s2940_s30 = sshll.u32 %s2937_s25, 4  ;;  %s2941_s30 = int_to_ptr.hbm [resolvable:$true] %s2940_s30 }
 0x966   : > { %v2576_v55 = vpop.f32.mrf.mxu1  ;;  %s3990_s7 = sshra.s32 %s2941_s30, 4  ;;  %s3991_s7 = int_to_ptr.hbm [resolvable:$true] %s3990_s7 }
 0x967   : > { %2675 = vrot.lane.b32.xlu2 %v2576_v55, %s4089_s2  ;;  %v2787_v55 = vperm.slane %v4720_v49, 1  ;;  %p3997_p9 = scmp.lt.s32.totalorder %s3991_s7, %s5086_s17 }
 0x96e   : > { %v2668_v45 = vpop.f32.mrf.mxu1 }
 0x96f   : > { %2691 = vrot.lane.b32.xlu0 %v2668_v45, %s4091_s3  ;;  %s2926_s3 = scalar_lea.sflag [#allocation4], %s4426_s11 }
 0x99c   : > { %v2674_v61 = vpop.permute.xlu2 %2673 }
 0x99d   : > { %v2695_v27 = vsel %vm1153_vm1, %v2507_v50, %v2674_v61  ;;  %v2784_v50 = vperm.slane %v4713_v47, 1 }
 0x9c1   : > { %v2676_v9 = vpop.permute.xlu2 %2675 }
 0x9c2   : > { %v2682_v63 = vpop.permute.xlu1 %2681  ;;  %v2696_v12 = vsel %vm1153_vm1, %v2530_v53, %v2676_v9  ;;  %v2832_v53 = vld [vmem:[%s5083_s10 + $0x18] sm:$0xff]  ;;  %v2830_v9 = vld [vmem:[%s5083_s10 + $0x8] sm:$0xff] }
 0x9c3   : > { %v2697_v26 = vsel %vm1762_vm6, %v2695_v27, %v2682_v63  ;;  %2860 = vmatpush.msra.mxu0 %v2832_v53 }
 0x9ce   : > { %v2690_v0 = vpop.permute.xlu0 %2689 }
 0x9cf   : > { %v2699_v4 = vsel %vm1765_vm7, %v2697_v26, %v2690_v0 }
 0x9d0   : > { %3278 = vmatmul.msk.f32.vlgmr.msrb.gmra.mxu2 %vm1050_vm0, %v2699_v4  ;;  %v2831_v4 = vld [vmem:[%s5083_s10 + $0x10] sm:$0xff] }
 0x9d1   : > { %2861 = vmatpush.msra.mxu0 %v2831_v4 }
 0x9d3   : > { %2862 = vmatpush.msra.mxu0 %v2830_v9 }
 0x9d7   : > { %v2684_v11 = vpop.permute.xlu1 %2683 }
 0x9d8   : > { %v2698_v3 = vsel %vm1762_vm6, %v2696_v12, %v2684_v11  ;;  %v2829_v11 = vld [vmem:[%s5083_s10] sm:$0xff] }
 0x9d9   : > { %2863 = vmatpush.msra.mxu0 %v2829_v11  ;;  %v3504_v12 = vld [vmem:[%s5084_s16] ss:$0 sm:$0xff]  ;;  %s3992_s16 = scalar_lea.hbm %s3991_s7, 16 }
 0x9da   : > { %p3993_p1 = scmp.ne.s32.totalorder %s3991_s7, %s3992_s16 }
 0x9dc   : > { %p3994_p13 = pnand %p3993_p1, %p4363_p0 }
 0x9de   : > { %p3995_p7 = pneg %p3994_p13 }
 0x9e1   : > { %v2692_v8 = vpop.permute.xlu0 %2691 }
 0x9e2   : > { %v2700_v13 = vsel %vm1765_vm7, %v2698_v3, %v2692_v8 }
 0x9e3   : > { %3279 = vmatmul.msk.f32.gmra.mxu2 %vm1050_vm0, %v2700_v13 }
 0xa53   : > { %v2732_v14 = vpop.f32.mrf.mxu2 }
 0xa54   : > { %v2733_v16 = vadd.f32 %v3503_v46, %v2732_v14 }
 0xa56   : > { %v2738_v17 = vadd.f32 %v2733_v16, %v4727_v2 }
 0xa58   : > { %v2740_v19 = vsel %vm1050_vm0, %v2738_v17, 0.0 }
 0xa59   : > { %2741 = vadd.xlane.f32.xlu2 %v2740_v19 }
 0xa66   : > { %v2735_v32 = vpop.f32.mrf.mxu2 }
 0xa67   : > { %v2736_v52 = vadd.f32 %v3503_v46, %v2735_v32 }
 0xa69   : > { %v2739_v20 = vadd.f32 %v2736_v52, %v4733_v1  ;;  %v2793_v1 = vld [vmem:[#allocation22 + $0x18] sm:$0xff] }
 0xa6a   : > { %2816 = vmatpush.msrb.mxu3 %v2793_v1 }
 0xa6b   : > { %v2743_v10 = vsel %vm1050_vm0, %v2739_v20, 0.0 }
 0xa6c   : > { %2744 = vadd.xlane.f32.xlu1 %v2743_v10  ;;  %2817 = vmatpush.msrb.mxu3 %v2792_v15 }
 0xa6e   : > { %2818 = vmatpush.msrb.mxu3 %v2791_v37 }
 0xa70   : > { %2819 = vmatpush.msrb.mxu3 %v2790_v35 }
 0xacc   : > { %v2742_v33 = vpop.xlane.xlu2 %2741 }
 0xacd   : > { %v2746_v23 = vmul.f32 %v2742_v33, %v4678_v62 }
 0xacf   : > { %v2748_v25 = vsub.f32 %v2738_v17, %v2746_v23  ;;  %v3505_v17 = vld [vmem:[%s5085_s21] ss:$0 sm:$0xff]  ;;  %s3996_s21 = scalar_lea.hbm %s5086_s17, 32 }
 0xad0   : > { %p3998_p5 = scmp.lt.s32.totalorder %s3996_s21, %s3992_s16 }
 0xad1   : > { %v2750_v28 = vmul.f32 %v2748_v25, %v2748_v25 }
 0xad2   : > { %p3999_p8 = por %p3998_p5, %p3997_p9 }
 0xad3   : > { %v2752_v24 = vsel %vm1050_vm0, %v2750_v28, 0.0 }
 0xad4   : > { %2753 = vadd.xlane.f32.xlu0 %v2752_v24  ;;  %p4000_p10 = pnand %p3999_p8, %p3995_p7 }
 0xadf   : > { %v2745_v29 = vpop.xlane.xlu1 %2744 }
 0xae0   : > { %v2747_v2 = vmul.f32 %v2745_v29, %v4678_v62 }
 0xae2   : > { %v2749_v30 = vsub.f32 %v2739_v20, %v2747_v2 }
 0xae4   : > { %v2751_v31 = vmul.f32 %v2749_v30, %v2749_v30 }
 0xae6   : > { %v2755_v34 = vsel %vm1050_vm0, %v2751_v31, 0.0 }
 0xae7   : > { %2756 = vadd.xlane.f32.xlu2 %v2755_v34 }
 0xb47   : > { %v2754_v7 = vpop.xlane.xlu0 %2753 }
 0xb48   : > { %v2758_v5 = vmul.f32 %v2754_v7, %v4678_v62 }
 0xb4a   : > { %v2760_v22 = vadd.f32 1e-05, %v2758_v5 }
 0xb4c   : > { %3576 = vrsqrt.f32 %v2760_v22  ;;  %vm2768_vm6 = vweird.f32 %v2760_v22 }
 0xb52   : > { %v3577_v21 = vpop.eup %3576 }
 0xb53   : > { %v2763_v36 = vmul.f32 %v3577_v21, %v2760_v22  ;;  %vm2769_vm1 = vweird.f32 %v3577_v21 }
 0xb54   : > { %vm2770_vm7 = vmor %vm2768_vm6, %vm2769_vm1 }
 0xb55   : > { %v2764_v38 = vmul.f32 %v3577_v21, %v2763_v36 }
 0xb57   : > { %v2765_v40 = vmul.f32 0.5, %v2764_v38 }
 0xb59   : > { %v2766_v43 = vsub.f32 1.5, %v2765_v40 }
 0xb5a   : > { %v2757_v18 = vpop.xlane.xlu2 %2756 }
 0xb5b   : > { %v2767_v39 = vmul.f32 %v3577_v21, %v2766_v43  ;;  %v2759_v6 = vmul.f32 %v2757_v18, %v4678_v62  ;;  %v2917_v18 = vperm.slane %v3584_v44, 2 }
 0xb5d   : > { %v2771_v51 = vsel %vm2770_vm7, %v3577_v21, %v2767_v39  ;;  %v2761_v56 = vadd.f32 1e-05, %v2759_v6 }
 0xb5e   : > { %v2782_v54 = vmul.f32 %v2771_v51, %v2748_v25 }
 0xb5f   : > { %3578 = vrsqrt.f32 %v2761_v56  ;;  %vm2778_vm12 = vweird.f32 %v2761_v56 }
 0xb60   : > { %v2785_v45 = vmul.f32 %v2784_v50, %v2782_v54 }
 0xb62   : > { %v2788_v58 = vadd.f32 %v2787_v55, %v2785_v45 }
 0xb64   : > { %3280 = vmatmul.msk.f32.vlgmr.msrb.gmra.mxu3 %vm1050_vm0, %v2788_v58 }
 0xb65   : > { %v3579_v59 = vpop.eup %3578 }
 0xb66   : > { %v2773_v47 = vmul.f32 %v3579_v59, %v2761_v56  ;;  %vm2779_vm11 = vweird.f32 %v3579_v59 }
 0xb67   : > { %vm2780_vm13 = vmor %vm2778_vm12, %vm2779_vm11 }
 0xb68   : > { %v2774_v60 = vmul.f32 %v3579_v59, %v2773_v47 }
 0xb6a   : > { %v2775_v57 = vmul.f32 0.5, %v2774_v60 }
 0xb6c   : > { %v2776_v61 = vsub.f32 1.5, %v2775_v57 }
 0xb6e   : > { %v2777_v63 = vmul.f32 %v3579_v59, %v2776_v61 }
 0xb70   : > { %v2781_v27 = vsel %vm2780_vm13, %v3579_v59, %v2777_v63 }
 0xb71   : > { %v2783_v26 = vmul.f32 %v2781_v27, %v2749_v30 }
 0xb73   : > { %v2786_v0 = vmul.f32 %v2784_v50, %v2783_v26  ;;  %v2920_v50 = vperm.slane %v3585_v48, 2 }
 0xb75   : > { %v2789_v49 = vadd.f32 %v2787_v55, %v2786_v0 }
 0xb77   : > { %3281 = vmatmul.msk.f32.gmra.mxu3 %vm1050_vm0, %v2789_v49 }
 0xbe7   : > { %v2821_v3 = vpop.f32.mrf.mxu3 }
 0xbe8   : > { %v2822_v8 = vadd.f32 %v3504_v12, %v2821_v3 }
 0xbea   : > { %v2827_v13 = vmax.f32 %v2822_v8, 0.0 }
 0xbec   : > { %3282 = vmatmul.msk.f32.vlgmr.msra.gmra.mxu0 %vm2841_vm14, %v2827_v13 }
 0xbfa   : > { %v2824_v46 = vpop.f32.mrf.mxu3 }
 0xbfb   : > { %v2825_v14 = vadd.f32 %v3504_v12, %v2824_v46 }
 0xbfd   : > { %v2828_v16 = vmax.f32 %v2825_v14, 0.0 }
 0xbff   : > { %3283 = vmatmul.msk.f32.gmra.mxu0 %vm2841_vm14, %v2828_v16 }
 0xc69   : > { %v2865_v19 = vpop.f32.mrf.mxu0 }
 0xc6a   : > { %v2866_v32 = vadd.f32 %v3505_v17, %v2865_v19 }
 0xc6c   : > { %v2871_v52 = vadd.f32 %v2866_v32, %v2788_v58 }
 0xc6e   : > { %v2873_v20 = vsel %vm1050_vm0, %v2871_v52, 0.0 }
 0xc6f   : > { %2874 = vadd.xlane.f32.xlu1 %v2873_v20 }
 0xc7c   : > { %v2868_v10 = vpop.f32.mrf.mxu0 }
 0xc7d   : > { %v2869_v33 = vadd.f32 %v3505_v17, %v2868_v10 }
 0xc7f   : > { %v2872_v23 = vadd.f32 %v2869_v33, %v2789_v49 }
 0xc81   : > { %v2876_v25 = vsel %vm1050_vm0, %v2872_v23, 0.0 }
 0xc82   : > { %2877 = vadd.xlane.f32.xlu0 %v2876_v25 }
 0xce2   : > { %v2875_v28 = vpop.xlane.xlu1 %2874 }
 0xce3   : > { %v2879_v24 = vmul.f32 %v2875_v28, %v4678_v62 }
 0xce5   : > { %v2881_v29 = vsub.f32 %v2871_v52, %v2879_v24 }
 0xce7   : > { %v2883_v2 = vmul.f32 %v2881_v29, %v2881_v29 }
 0xce9   : > { %v2885_v30 = vsel %vm1050_vm0, %v2883_v2, 0.0 }
 0xcea   : > { %2886 = vadd.xlane.f32.xlu2 %v2885_v30 }
 0xcf5   : > { %v2878_v31 = vpop.xlane.xlu0 %2877 }
 0xcf6   : > { %v2880_v34 = vmul.f32 %v2878_v31, %v4678_v62 }
 0xcf8   : > { %v2882_v1 = vsub.f32 %v2872_v23, %v2880_v34 }
 0xcfa   : > { %v2884_v15 = vmul.f32 %v2882_v1, %v2882_v1 }
 0xcfc   : > { %v2888_v37 = vsel %vm1050_vm0, %v2884_v15, 0.0 }
 0xcfd   : > { %2889 = vadd.xlane.f32.xlu1 %v2888_v37 }
 0xd5d   : > { %v2887_v35 = vpop.xlane.xlu2 %2886 }
 0xd5e   : > { %v2891_v7 = vmul.f32 %v2887_v35, %v4678_v62 }
 0xd60   : > { %v2893_v5 = vadd.f32 1e-05, %v2891_v7 }
 0xd62   : > { %3580 = vrsqrt.f32 %v2893_v5  ;;  %vm2901_vm2 = vweird.f32 %v2893_v5 }
 0xd68   : > { %v3581_v22 = vpop.eup %3580 }
 0xd69   : > { %v2896_v21 = vmul.f32 %v3581_v22, %v2893_v5  ;;  %vm2902_vm15 = vweird.f32 %v3581_v22 }
 0xd6a   : > { %vm2903_vm3 = vmor %vm2901_vm2, %vm2902_vm15 }
 0xd6b   : > { %v2897_v36 = vmul.f32 %v3581_v22, %v2896_v21 }
 0xd6d   : > { %v2898_v38 = vmul.f32 0.5, %v2897_v36 }
 0xd6f   : > { %v2899_v40 = vsub.f32 1.5, %v2898_v38 }
 0xd70   : > { %v2890_v41 = vpop.xlane.xlu1 %2889 }
 0xd71   : > { %v2900_v42 = vmul.f32 %v3581_v22, %v2899_v40  ;;  %v2892_v43 = vmul.f32 %v2890_v41, %v4678_v62 }
 0xd73   : > { %v2904_v39 = vsel %vm2903_vm3, %v3581_v22, %v2900_v42  ;;  %v2894_v6 = vadd.f32 1e-05, %v2892_v43 }
 0xd74   : > { %v2915_v51 = vmul.f32 %v2904_v39, %v2881_v29 }
 0xd75   : > { %3582 = vrsqrt.f32 %v2894_v6  ;;  %vm2911_vm5 = vweird.f32 %v2894_v6 }
 0xd76   : > { %v2918_v56 = vmul.f32 %v2917_v18, %v2915_v51 }
 0xd78   : > { %v2921_v53 = vadd.f32 %v2920_v50, %v2918_v56 }
 0xd7a   : > { %2923 = vst.msk [vmem:[%s1009_s6] sm:$0xff] %vm1050_vm0, %v2921_v53 }
 0xd7b   : > { %v3583_v62 = vpop.eup %3582 }
 0xd7c   : > { %v2906_v54 = vmul.f32 %v3583_v62, %v2894_v6  ;;  %vm2912_vm4 = vweird.f32 %v3583_v62 }
 0xd7d   : > { %vm2913_vm8 = vmor %vm2911_vm5, %vm2912_vm4 }
 0xd7e   : > { %v2907_v55 = vmul.f32 %v3583_v62, %v2906_v54 }
 0xd80   : > { %v2908_v45 = vmul.f32 0.5, %v2907_v55 }
 0xd82   : > { %v2909_v58 = vsub.f32 1.5, %v2908_v45 }
 0xd84   : > { %v2910_v59 = vmul.f32 %v3583_v62, %v2909_v58 }
 0xd86   : > { %v2914_v47 = vsel %vm2913_vm8, %v3583_v62, %v2910_v59 }
 0xd87   : > { %v2916_v60 = vmul.f32 %v2914_v47, %v2882_v1 }
 0xd89   : > { %v2919_v57 = vmul.f32 %v2917_v18, %v2916_v60 }
 0xd8b   : > { %v2922_v61 = vadd.f32 %v2920_v50, %v2919_v57 }
 0xd8d   : > { %2924 = vst.msk [vmem:[%s1009_s6 + $0x8] sm:$0xff] %vm1050_vm0, %v2922_v61 }
 0xd8e   : > { %4003 = shalt.err (!%p4000_p10)
}
 0xd8f   : > { %s4093_s11 = smov 128  }
 0xd90   : > { %3342 = dma.vmem_to_hbm [thread:$0]  (%p4363_p0), %s2939_s27, 256, %s2941_s30, %s2926_s3, %s4093_s11, %s4093_s11, %s4089_s2  }
 0xd91 PF: > { %s2955_s9 = sand.u32 1, %s4058_s5   ;;  %p5087_p11 = scmp.ge.s32.totalorder %s4070_s28, 2 }
 0xd92   : > { %s2956_s14 = scalar_lea.sflag [#allocation4], %s2955_s9 }
 0xd93   : > { %p3386_p12 = pnand %p5087_p11, %p4371_p6 }
 0xd95   : > { %p3387_p2 = pneg %p3386_p12 }
 0xd97   : > { %4053 = dma.done.wait (%p3387_p2), %s2956_s14, 256  }
 0xd98   : > { %4055 = vsyncadd (%p3387_p2), %s2956_s14, 4294967040  ;;  %s5088_s28 = sld [smem:[#allocation34_spill]]  ;;  %s5091_s5 = smov %s4062_s26 }
 0xd99   : > { %s5089_s6 = sld [smem:[#allocation33_spill]] }
 0xd9a   : > { %s5090_s27 = sld [smem:[#allocation35_spill]] }
 0xd9e   : > { %p45_p4 = scmp.ge.s32.totalorder %s5088_s28, 4  }
 0xd9f   : > { %s5092_s26 = smov %s5089_s6 }
 0xda0   :  { %47 = sbr.rel (!%p45_p4) target bundleno = 35 (0x23), region = 224 }
 0xda5   :  { %2962 = vsyncpa [#allocation3], 1 }
 0xda6   :  { %2964 = vsyncpa [#allocation3 + $0x1], 1 }
 0xda7   :  { %2965 = vsyncpa [#allocation6], 1 }
 0xda8   :  { %2967 = vsyncpa [#allocation6 + $0x1], 1 }
 0xda9   :  { %2968 = vsyncpa [#allocation9], 1 }
 0xdaa   :  { %2969 = vsyncpa [#allocation12], 1 }
 0xdab   :  { %2970 = vsyncpa [#allocation15], 1 }
 0xdac   :  { %2971 = vsyncpa [#allocation18], 1 }
 0xdad   :  { %2972 = vsyncpa [#allocation21], 1 }
 0xdae   :  { %2973 = vsyncpa [#allocation4], 1 }
 0xdaf   :  { %2975 = vsyncpa [#allocation4 + $0x1], 1 }

</bundles_post_ra>
